<compile_context>
chip_gen: v5e
topology: v5e:2x2
jax: 0.10.0
libtpu: 0.0.40
codegen_flags: <defaults>
</compile_context>

<pallas_src>
import functools

import jax
import jax.numpy as jnp
from jax import lax
from jax.experimental import pallas as pl
from jax.experimental.pallas import tpu as pltpu


def _round_up(a, b):
    return (a + b - 1) // b * b


def _kwta_abs_kernel(x_ref, o_ref, *, k, n_iters, hi_bits, true_n):
    # Block: (rows, n_pad), rows % sublane_min == 0, n_pad % 128 == 0.
    x = x_ref[...]
    rows, n_pad = x.shape

    # Magnitude bit pattern via a single integer AND (no abs, no upcast).
    # Non-negative float bit patterns order the same as the float values.
    if x.dtype == jnp.float32:
        a_bits = pltpu.bitcast(x, jnp.int32) & jnp.int32(0x7FFFFFFF)
    else:  # bf16 / f16: native 16-bit bits, zero-extended for the search.
        a_bits = (pltpu.bitcast(x, jnp.int16) & jnp.int16(0x7FFF)).astype(jnp.int32)

    # Mask lanes beyond the true spatial extent (partial lane block) so they
    # never count toward the threshold.  -1 < every mid (mids are >= 0).
    if true_n != n_pad:
        lane = lax.broadcasted_iota(jnp.int32, (rows, n_pad), 1)
        a_bits = jnp.where(lane < true_n, a_bits, jnp.int32(-1))

    # Hoisted MXU reducer: exact counts (0/1 in bf16, f32 accumulation).
    ones = jnp.ones((n_pad, 128), jnp.bfloat16)
    k_f = jnp.float32(k)

    lo = jnp.zeros((rows, 1), jnp.int32)              # count(a >= lo) >= k
    hi = jnp.full((rows, 1), hi_bits, jnp.int32)      # count(a >= hi) <  k

    # Exact binary search over the bit pattern; static, fully unrolled.
    for _ in range(n_iters):
        mid = lo + ((hi - lo) >> 1)
        mask = (a_bits >= mid).astype(jnp.bfloat16)             # VPU: cmp+cast
        cnt = lax.dot_general(mask, ones, (((1,), (0,)), ((), ())),
                              preferred_element_type=jnp.float32)  # MXU count
        ge_k = cnt[:, 0:1] >= k_f
        lo = jnp.where(ge_k, mid, lo)
        hi = jnp.where(ge_k, hi, mid)

    # lo == bit pattern of the k-th largest |x| per row (ties kept, as torch).
    keep = a_bits >= lo
    o_ref[...] = jnp.where(keep, x, jnp.zeros_like(x))


def sparsify2d_abs(x, sparse_ratio=0.5, *, target_tile_bytes=2 << 20):
    """Forward pass of Sparsify2D_abs. x: (B, C, H, W) -> same shape."""
    B, C, H, W = x.shape
    N = H * W
    k = int(sparse_ratio * N)
    assert 1 <= k <= N, "int(sparse_ratio * H * W) must be in [1, H*W]"

    dt = jnp.dtype(x.dtype)
    if dt == jnp.dtype(jnp.float32):
        sublane_min, n_iters, hi_bits = 8, 31, 0x7F800001   # just above +inf
    elif dt in (jnp.dtype(jnp.bfloat16), jnp.dtype(jnp.float16)):
        sublane_min, n_iters, hi_bits = 16, 15, 0x8000      # > any 15-bit pattern
    else:
        raise NotImplementedError(f"unsupported dtype {dt}")
    itemsize = dt.itemsize

    R = B * C                      # fold batch & channel into one row axis
    n_pad = _round_up(N, 128)      # lane-aligned block width (no HBM padding)

    # Row tile: largest sublane multiple whose *input* bytes fit the target
    # (total in-kernel footprint is ~6-7x that: double-buffered in/out + int32
    # bits + bf16 mask temps -- still well under 32 MiB scoped on every gen,
    # incl. v7x's 64 MiB physical VMEM).
    row_in_bytes = n_pad * itemsize
    rt = max(sublane_min,
             (target_tile_bytes // row_in_bytes) // sublane_min * sublane_min)
    # Keep >= ~4 grid blocks when R permits so both v7x TensorCores get work
    # and the BlockSpec pipeline has something to overlap.
    if R >= 4 * sublane_min:
        rt = min(rt, max(sublane_min, (R // 4) // sublane_min * sublane_min))
    rt = min(rt, _round_up(R, sublane_min))

    grid = (pl.cdiv(R, rt),)
    kern = functools.partial(_kwta_abs_kernel, k=k, n_iters=n_iters,
                             hi_bits=hi_bits, true_n=N)

    xf = x.reshape(R, N)           # metadata-only reshape; no pad / slice
    out = pl.pallas_call(
        kern,
        out_shape=jax.ShapeDtypeStruct((R, N), x.dtype),
        grid_spec=pltpu.PrefetchScalarGridSpec(
            num_scalar_prefetch=0,
            grid=grid,
            in_specs=[pl.BlockSpec((rt, n_pad), lambda r: (r, 0))],
            out_specs=pl.BlockSpec((rt, n_pad), lambda r: (r, 0)),
        ),
        compiler_params=pltpu.CompilerParams(
            dimension_semantics=("parallel",),
            vmem_limit_bytes=32 * 1024 * 1024,
        ),
        # VALU-bound kernel: ~(cmp + cast + select)*n_iters + mask/build/store
        # VPU ops per element; HBM traffic is only one read + one write.
        cost_estimate=pl.CostEstimate(
            flops=(3 * n_iters + 8) * R * n_pad,
            transcendentals=0,
            bytes_accessed=2 * R * N * itemsize,
        ),
    )(xf)

    return out.reshape(B, C, H, W)


def _reference_sparsify2d_abs(x, sparse_ratio=0.5):
    """Pure-JAX reference mirroring the PyTorch forward (sort-based)."""
    B, C, H, W = x.shape
    N = H * W
    k = int(sparse_ratio * N)
    a = jnp.abs(x).reshape(B, C, N)
    topval = jnp.sort(a, axis=-1)[:, :, N - k]           # k-th largest
    comp = (jnp.abs(x) >= topval[:, :, None, None]).astype(x.dtype)
    return comp * x


if __name__ == "__main__":
    key = jax.random.PRNGKey(0)
    x = jax.random.normal(key, (2, 4, 16, 16), dtype=jnp.float32)

    y = sparsify2d_abs(x, sparse_ratio=0.5)
    y = jax.block_until_ready(y)

    y_ref = _reference_sparsify2d_abs(x, sparse_ratio=0.5)
    assert y.shape == x.shape and y.dtype == x.dtype
    assert jnp.allclose(y, y_ref), "Pallas kernel mismatch vs reference"

    print("KERNEL_OK")
</pallas_src>

<mosaic_0001>
module attributes {stable_mosaic.version = 11 : i64} {
  func.func @_kwta_abs_kernel(%arg0: i32, %arg1: memref<8x256xf32, #tpu.memory_space<vmem>>, %arg2: memref<8x256xf32, #tpu.memory_space<vmem>>) attributes {dimension_semantics = [#tpu.dimension_semantics<parallel>], iteration_bounds = array<i64: 1>, scalar_prefetch = 0 : i64, scratch_operands = 0 : i64, tpu.core_type = #tpu.core_type<tc>, window_params = [{transform_indices = @transform_0, window_bounds = array<i64: 8, 256>}, {transform_indices = @transform_1, window_bounds = array<i64: 8, 256>}]} {
    %c0 = arith.constant 0 : index
    %c0_0 = arith.constant 0 : index
    %0 = vector.load %arg1[%c0, %c0_0] : memref<8x256xf32, #tpu.memory_space<vmem>>, vector<8x256xf32>
    %1 = tpu.bitcast %0 : vector<8x256xf32> -> vector<8x256xi32>
    %c2147483647_i32 = arith.constant 2147483647 : i32
    %2 = vector.broadcast %c2147483647_i32 : i32 to vector<8x256xi32>
    %3 = arith.andi %1, %2 : vector<8x256xi32>
    %cst = arith.constant 1.000000e+00 : bf16
    %4 = vector.broadcast %cst : bf16 to vector<256x128xbf16>
    %c0_i32 = arith.constant 0 : i32
    %5 = vector.broadcast %c0_i32 : i32 to vector<8x1xi32>
    %c2139095041_i32 = arith.constant 2139095041 : i32
    %6 = vector.broadcast %c2139095041_i32 : i32 to vector<8x1xi32>
    %7 = arith.subi %6, %5 : vector<8x1xi32>
    %c1_i32 = arith.constant 1 : i32
    %8 = vector.broadcast %c1_i32 : i32 to vector<8x1xi32>
    %9 = arith.shrsi %7, %8 : vector<8x1xi32>
    %10 = arith.addi %5, %9 : vector<8x1xi32>
    %11 = vector.broadcast %10 : vector<8x1xi32> to vector<8x256xi32>
    %12 = arith.cmpi sge, %3, %11 : vector<8x256xi32>
    %13 = arith.extui %12 : vector<8x256xi1> to vector<8x256xi32>
    %14 = arith.sitofp %13 : vector<8x256xi32> to vector<8x256xf32>
    %15 = arith.truncf %14 : vector<8x256xf32> to vector<8x256xbf16>
    %cst_1 = arith.constant dense<0.000000e+00> : vector<8x128xf32>
    %16 = tpu.matmul %15, %4, %cst_1 {dimension_numbers = #tpu.dot_dimension_numbers<[1], [0], [0], [1], [0, 0, 1, 1], [], []>} : vector<8x256xbf16>, vector<256x128xbf16>, vector<8x128xf32> -> vector<8x128xf32>
    %17 = vector.extract_strided_slice %16 {offsets = [0, 0], sizes = [8, 1], strides = [1, 1]} : vector<8x128xf32> to vector<8x1xf32>
    %cst_2 = arith.constant 1.280000e+02 : f32
    %18 = vector.broadcast %cst_2 : f32 to vector<8x1xf32>
    %19 = arith.cmpf oge, %17, %18 : vector<8x1xf32>
    %20 = arith.select %19, %10, %5 : vector<8x1xi1>, vector<8x1xi32>
    %21 = arith.select %19, %6, %10 : vector<8x1xi1>, vector<8x1xi32>
    %22 = arith.subi %21, %20 : vector<8x1xi32>
    %c1_i32_3 = arith.constant 1 : i32
    %23 = vector.broadcast %c1_i32_3 : i32 to vector<8x1xi32>
    %24 = arith.shrsi %22, %23 : vector<8x1xi32>
    %25 = arith.addi %20, %24 : vector<8x1xi32>
    %26 = vector.broadcast %25 : vector<8x1xi32> to vector<8x256xi32>
    %27 = arith.cmpi sge, %3, %26 : vector<8x256xi32>
    %28 = arith.extui %27 : vector<8x256xi1> to vector<8x256xi32>
    %29 = arith.sitofp %28 : vector<8x256xi32> to vector<8x256xf32>
    %30 = arith.truncf %29 : vector<8x256xf32> to vector<8x256xbf16>
    %cst_4 = arith.constant dense<0.000000e+00> : vector<8x128xf32>
    %31 = tpu.matmul %30, %4, %cst_4 {dimension_numbers = #tpu.dot_dimension_numbers<[1], [0], [0], [1], [0, 0, 1, 1], [], []>} : vector<8x256xbf16>, vector<256x128xbf16>, vector<8x128xf32> -> vector<8x128xf32>
    %32 = vector.extract_strided_slice %31 {offsets = [0, 0], sizes = [8, 1], strides = [1, 1]} : vector<8x128xf32> to vector<8x1xf32>
    %cst_5 = arith.constant 1.280000e+02 : f32
    %33 = vector.broadcast %cst_5 : f32 to vector<8x1xf32>
    %34 = arith.cmpf oge, %32, %33 : vector<8x1xf32>
    %35 = arith.select %34, %25, %20 : vector<8x1xi1>, vector<8x1xi32>
    %36 = arith.select %34, %21, %25 : vector<8x1xi1>, vector<8x1xi32>
    %37 = arith.subi %36, %35 : vector<8x1xi32>
    %c1_i32_6 = arith.constant 1 : i32
    %38 = vector.broadcast %c1_i32_6 : i32 to vector<8x1xi32>
    %39 = arith.shrsi %37, %38 : vector<8x1xi32>
    %40 = arith.addi %35, %39 : vector<8x1xi32>
    %41 = vector.broadcast %40 : vector<8x1xi32> to vector<8x256xi32>
    %42 = arith.cmpi sge, %3, %41 : vector<8x256xi32>
    %43 = arith.extui %42 : vector<8x256xi1> to vector<8x256xi32>
    %44 = arith.sitofp %43 : vector<8x256xi32> to vector<8x256xf32>
    %45 = arith.truncf %44 : vector<8x256xf32> to vector<8x256xbf16>
    %cst_7 = arith.constant dense<0.000000e+00> : vector<8x128xf32>
    %46 = tpu.matmul %45, %4, %cst_7 {dimension_numbers = #tpu.dot_dimension_numbers<[1], [0], [0], [1], [0, 0, 1, 1], [], []>} : vector<8x256xbf16>, vector<256x128xbf16>, vector<8x128xf32> -> vector<8x128xf32>
    %47 = vector.extract_strided_slice %46 {offsets = [0, 0], sizes = [8, 1], strides = [1, 1]} : vector<8x128xf32> to vector<8x1xf32>
    %cst_8 = arith.constant 1.280000e+02 : f32
    %48 = vector.broadcast %cst_8 : f32 to vector<8x1xf32>
    %49 = arith.cmpf oge, %47, %48 : vector<8x1xf32>
    %50 = arith.select %49, %40, %35 : vector<8x1xi1>, vector<8x1xi32>
    %51 = arith.select %49, %36, %40 : vector<8x1xi1>, vector<8x1xi32>
    %52 = arith.subi %51, %50 : vector<8x1xi32>
    %c1_i32_9 = arith.constant 1 : i32
    %53 = vector.broadcast %c1_i32_9 : i32 to vector<8x1xi32>
    %54 = arith.shrsi %52, %53 : vector<8x1xi32>
    %55 = arith.addi %50, %54 : vector<8x1xi32>
    %56 = vector.broadcast %55 : vector<8x1xi32> to vector<8x256xi32>
    %57 = arith.cmpi sge, %3, %56 : vector<8x256xi32>
    %58 = arith.extui %57 : vector<8x256xi1> to vector<8x256xi32>
    %59 = arith.sitofp %58 : vector<8x256xi32> to vector<8x256xf32>
    %60 = arith.truncf %59 : vector<8x256xf32> to vector<8x256xbf16>
    %cst_10 = arith.constant dense<0.000000e+00> : vector<8x128xf32>
    %61 = tpu.matmul %60, %4, %cst_10 {dimension_numbers = #tpu.dot_dimension_numbers<[1], [0], [0], [1], [0, 0, 1, 1], [], []>} : vector<8x256xbf16>, vector<256x128xbf16>, vector<8x128xf32> -> vector<8x128xf32>
    %62 = vector.extract_strided_slice %61 {offsets = [0, 0], sizes = [8, 1], strides = [1, 1]} : vector<8x128xf32> to vector<8x1xf32>
    %cst_11 = arith.constant 1.280000e+02 : f32
    %63 = vector.broadcast %cst_11 : f32 to vector<8x1xf32>
    %64 = arith.cmpf oge, %62, %63 : vector<8x1xf32>
    %65 = arith.select %64, %55, %50 : vector<8x1xi1>, vector<8x1xi32>
    %66 = arith.select %64, %51, %55 : vector<8x1xi1>, vector<8x1xi32>
    %67 = arith.subi %66, %65 : vector<8x1xi32>
    %c1_i32_12 = arith.constant 1 : i32
    %68 = vector.broadcast %c1_i32_12 : i32 to vector<8x1xi32>
    %69 = arith.shrsi %67, %68 : vector<8x1xi32>
    %70 = arith.addi %65, %69 : vector<8x1xi32>
    %71 = vector.broadcast %70 : vector<8x1xi32> to vector<8x256xi32>
    %72 = arith.cmpi sge, %3, %71 : vector<8x256xi32>
    %73 = arith.extui %72 : vector<8x256xi1> to vector<8x256xi32>
    %74 = arith.sitofp %73 : vector<8x256xi32> to vector<8x256xf32>
    %75 = arith.truncf %74 : vector<8x256xf32> to vector<8x256xbf16>
    %cst_13 = arith.constant dense<0.000000e+00> : vector<8x128xf32>
    %76 = tpu.matmul %75, %4, %cst_13 {dimension_numbers = #tpu.dot_dimension_numbers<[1], [0], [0], [1], [0, 0, 1, 1], [], []>} : vector<8x256xbf16>, vector<256x128xbf16>, vector<8x128xf32> -> vector<8x128xf32>
    %77 = vector.extract_strided_slice %76 {offsets = [0, 0], sizes = [8, 1], strides = [1, 1]} : vector<8x128xf32> to vector<8x1xf32>
    %cst_14 = arith.constant 1.280000e+02 : f32
    %78 = vector.broadcast %cst_14 : f32 to vector<8x1xf32>
    %79 = arith.cmpf oge, %77, %78 : vector<8x1xf32>
    %80 = arith.select %79, %70, %65 : vector<8x1xi1>, vector<8x1xi32>
    %81 = arith.select %79, %66, %70 : vector<8x1xi1>, vector<8x1xi32>
    %82 = arith.subi %81, %80 : vector<8x1xi32>
    %c1_i32_15 = arith.constant 1 : i32
    %83 = vector.broadcast %c1_i32_15 : i32 to vector<8x1xi32>
    %84 = arith.shrsi %82, %83 : vector<8x1xi32>
    %85 = arith.addi %80, %84 : vector<8x1xi32>
    %86 = vector.broadcast %85 : vector<8x1xi32> to vector<8x256xi32>
    %87 = arith.cmpi sge, %3, %86 : vector<8x256xi32>
    %88 = arith.extui %87 : vector<8x256xi1> to vector<8x256xi32>
    %89 = arith.sitofp %88 : vector<8x256xi32> to vector<8x256xf32>
    %90 = arith.truncf %89 : vector<8x256xf32> to vector<8x256xbf16>
    %cst_16 = arith.constant dense<0.000000e+00> : vector<8x128xf32>
    %91 = tpu.matmul %90, %4, %cst_16 {dimension_numbers = #tpu.dot_dimension_numbers<[1], [0], [0], [1], [0, 0, 1, 1], [], []>} : vector<8x256xbf16>, vector<256x128xbf16>, vector<8x128xf32> -> vector<8x128xf32>
    %92 = vector.extract_strided_slice %91 {offsets = [0, 0], sizes = [8, 1], strides = [1, 1]} : vector<8x128xf32> to vector<8x1xf32>
    %cst_17 = arith.constant 1.280000e+02 : f32
    %93 = vector.broadcast %cst_17 : f32 to vector<8x1xf32>
    %94 = arith.cmpf oge, %92, %93 : vector<8x1xf32>
    %95 = arith.select %94, %85, %80 : vector<8x1xi1>, vector<8x1xi32>
    %96 = arith.select %94, %81, %85 : vector<8x1xi1>, vector<8x1xi32>
    %97 = arith.subi %96, %95 : vector<8x1xi32>
    %c1_i32_18 = arith.constant 1 : i32
    %98 = vector.broadcast %c1_i32_18 : i32 to vector<8x1xi32>
    %99 = arith.shrsi %97, %98 : vector<8x1xi32>
    %100 = arith.addi %95, %99 : vector<8x1xi32>
    %101 = vector.broadcast %100 : vector<8x1xi32> to vector<8x256xi32>
    %102 = arith.cmpi sge, %3, %101 : vector<8x256xi32>
    %103 = arith.extui %102 : vector<8x256xi1> to vector<8x256xi32>
    %104 = arith.sitofp %103 : vector<8x256xi32> to vector<8x256xf32>
    %105 = arith.truncf %104 : vector<8x256xf32> to vector<8x256xbf16>
    %cst_19 = arith.constant dense<0.000000e+00> : vector<8x128xf32>
    %106 = tpu.matmul %105, %4, %cst_19 {dimension_numbers = #tpu.dot_dimension_numbers<[1], [0], [0], [1], [0, 0, 1, 1], [], []>} : vector<8x256xbf16>, vector<256x128xbf16>, vector<8x128xf32> -> vector<8x128xf32>
    %107 = vector.extract_strided_slice %106 {offsets = [0, 0], sizes = [8, 1], strides = [1, 1]} : vector<8x128xf32> to vector<8x1xf32>
    %cst_20 = arith.constant 1.280000e+02 : f32
    %108 = vector.broadcast %cst_20 : f32 to vector<8x1xf32>
    %109 = arith.cmpf oge, %107, %108 : vector<8x1xf32>
    %110 = arith.select %109, %100, %95 : vector<8x1xi1>, vector<8x1xi32>
    %111 = arith.select %109, %96, %100 : vector<8x1xi1>, vector<8x1xi32>
    %112 = arith.subi %111, %110 : vector<8x1xi32>
    %c1_i32_21 = arith.constant 1 : i32
    %113 = vector.broadcast %c1_i32_21 : i32 to vector<8x1xi32>
    %114 = arith.shrsi %112, %113 : vector<8x1xi32>
    %115 = arith.addi %110, %114 : vector<8x1xi32>
    %116 = vector.broadcast %115 : vector<8x1xi32> to vector<8x256xi32>
    %117 = arith.cmpi sge, %3, %116 : vector<8x256xi32>
    %118 = arith.extui %117 : vector<8x256xi1> to vector<8x256xi32>
    %119 = arith.sitofp %118 : vector<8x256xi32> to vector<8x256xf32>
    %120 = arith.truncf %119 : vector<8x256xf32> to vector<8x256xbf16>
    %cst_22 = arith.constant dense<0.000000e+00> : vector<8x128xf32>
    %121 = tpu.matmul %120, %4, %cst_22 {dimension_numbers = #tpu.dot_dimension_numbers<[1], [0], [0], [1], [0, 0, 1, 1], [], []>} : vector<8x256xbf16>, vector<256x128xbf16>, vector<8x128xf32> -> vector<8x128xf32>
    %122 = vector.extract_strided_slice %121 {offsets = [0, 0], sizes = [8, 1], strides = [1, 1]} : vector<8x128xf32> to vector<8x1xf32>
    %cst_23 = arith.constant 1.280000e+02 : f32
    %123 = vector.broadcast %cst_23 : f32 to vector<8x1xf32>
    %124 = arith.cmpf oge, %122, %123 : vector<8x1xf32>
    %125 = arith.select %124, %115, %110 : vector<8x1xi1>, vector<8x1xi32>
    %126 = arith.select %124, %111, %115 : vector<8x1xi1>, vector<8x1xi32>
    %127 = arith.subi %126, %125 : vector<8x1xi32>
    %c1_i32_24 = arith.constant 1 : i32
    %128 = vector.broadcast %c1_i32_24 : i32 to vector<8x1xi32>
    %129 = arith.shrsi %127, %128 : vector<8x1xi32>
    %130 = arith.addi %125, %129 : vector<8x1xi32>
    %131 = vector.broadcast %130 : vector<8x1xi32> to vector<8x256xi32>
    %132 = arith.cmpi sge, %3, %131 : vector<8x256xi32>
    %133 = arith.extui %132 : vector<8x256xi1> to vector<8x256xi32>
    %134 = arith.sitofp %133 : vector<8x256xi32> to vector<8x256xf32>
    %135 = arith.truncf %134 : vector<8x256xf32> to vector<8x256xbf16>
    %cst_25 = arith.constant dense<0.000000e+00> : vector<8x128xf32>
    %136 = tpu.matmul %135, %4, %cst_25 {dimension_numbers = #tpu.dot_dimension_numbers<[1], [0], [0], [1], [0, 0, 1, 1], [], []>} : vector<8x256xbf16>, vector<256x128xbf16>, vector<8x128xf32> -> vector<8x128xf32>
    %137 = vector.extract_strided_slice %136 {offsets = [0, 0], sizes = [8, 1], strides = [1, 1]} : vector<8x128xf32> to vector<8x1xf32>
    %cst_26 = arith.constant 1.280000e+02 : f32
    %138 = vector.broadcast %cst_26 : f32 to vector<8x1xf32>
    %139 = arith.cmpf oge, %137, %138 : vector<8x1xf32>
    %140 = arith.select %139, %130, %125 : vector<8x1xi1>, vector<8x1xi32>
    %141 = arith.select %139, %126, %130 : vector<8x1xi1>, vector<8x1xi32>
    %142 = arith.subi %141, %140 : vector<8x1xi32>
    %c1_i32_27 = arith.constant 1 : i32
    %143 = vector.broadcast %c1_i32_27 : i32 to vector<8x1xi32>
    %144 = arith.shrsi %142, %143 : vector<8x1xi32>
    %145 = arith.addi %140, %144 : vector<8x1xi32>
    %146 = vector.broadcast %145 : vector<8x1xi32> to vector<8x256xi32>
    %147 = arith.cmpi sge, %3, %146 : vector<8x256xi32>
    %148 = arith.extui %147 : vector<8x256xi1> to vector<8x256xi32>
    %149 = arith.sitofp %148 : vector<8x256xi32> to vector<8x256xf32>
    %150 = arith.truncf %149 : vector<8x256xf32> to vector<8x256xbf16>
    %cst_28 = arith.constant dense<0.000000e+00> : vector<8x128xf32>
    %151 = tpu.matmul %150, %4, %cst_28 {dimension_numbers = #tpu.dot_dimension_numbers<[1], [0], [0], [1], [0, 0, 1, 1], [], []>} : vector<8x256xbf16>, vector<256x128xbf16>, vector<8x128xf32> -> vector<8x128xf32>
    %152 = vector.extract_strided_slice %151 {offsets = [0, 0], sizes = [8, 1], strides = [1, 1]} : vector<8x128xf32> to vector<8x1xf32>
    %cst_29 = arith.constant 1.280000e+02 : f32
    %153 = vector.broadcast %cst_29 : f32 to vector<8x1xf32>
    %154 = arith.cmpf oge, %152, %153 : vector<8x1xf32>
    %155 = arith.select %154, %145, %140 : vector<8x1xi1>, vector<8x1xi32>
    %156 = arith.select %154, %141, %145 : vector<8x1xi1>, vector<8x1xi32>
    %157 = arith.subi %156, %155 : vector<8x1xi32>
    %c1_i32_30 = arith.constant 1 : i32
    %158 = vector.broadcast %c1_i32_30 : i32 to vector<8x1xi32>
    %159 = arith.shrsi %157, %158 : vector<8x1xi32>
    %160 = arith.addi %155, %159 : vector<8x1xi32>
    %161 = vector.broadcast %160 : vector<8x1xi32> to vector<8x256xi32>
    %162 = arith.cmpi sge, %3, %161 : vector<8x256xi32>
    %163 = arith.extui %162 : vector<8x256xi1> to vector<8x256xi32>
    %164 = arith.sitofp %163 : vector<8x256xi32> to vector<8x256xf32>
    %165 = arith.truncf %164 : vector<8x256xf32> to vector<8x256xbf16>
    %cst_31 = arith.constant dense<0.000000e+00> : vector<8x128xf32>
    %166 = tpu.matmul %165, %4, %cst_31 {dimension_numbers = #tpu.dot_dimension_numbers<[1], [0], [0], [1], [0, 0, 1, 1], [], []>} : vector<8x256xbf16>, vector<256x128xbf16>, vector<8x128xf32> -> vector<8x128xf32>
    %167 = vector.extract_strided_slice %166 {offsets = [0, 0], sizes = [8, 1], strides = [1, 1]} : vector<8x128xf32> to vector<8x1xf32>
    %cst_32 = arith.constant 1.280000e+02 : f32
    %168 = vector.broadcast %cst_32 : f32 to vector<8x1xf32>
    %169 = arith.cmpf oge, %167, %168 : vector<8x1xf32>
    %170 = arith.select %169, %160, %155 : vector<8x1xi1>, vector<8x1xi32>
    %171 = arith.select %169, %156, %160 : vector<8x1xi1>, vector<8x1xi32>
    %172 = arith.subi %171, %170 : vector<8x1xi32>
    %c1_i32_33 = arith.constant 1 : i32
    %173 = vector.broadcast %c1_i32_33 : i32 to vector<8x1xi32>
    %174 = arith.shrsi %172, %173 : vector<8x1xi32>
    %175 = arith.addi %170, %174 : vector<8x1xi32>
    %176 = vector.broadcast %175 : vector<8x1xi32> to vector<8x256xi32>
    %177 = arith.cmpi sge, %3, %176 : vector<8x256xi32>
    %178 = arith.extui %177 : vector<8x256xi1> to vector<8x256xi32>
    %179 = arith.sitofp %178 : vector<8x256xi32> to vector<8x256xf32>
    %180 = arith.truncf %179 : vector<8x256xf32> to vector<8x256xbf16>
    %cst_34 = arith.constant dense<0.000000e+00> : vector<8x128xf32>
    %181 = tpu.matmul %180, %4, %cst_34 {dimension_numbers = #tpu.dot_dimension_numbers<[1], [0], [0], [1], [0, 0, 1, 1], [], []>} : vector<8x256xbf16>, vector<256x128xbf16>, vector<8x128xf32> -> vector<8x128xf32>
    %182 = vector.extract_strided_slice %181 {offsets = [0, 0], sizes = [8, 1], strides = [1, 1]} : vector<8x128xf32> to vector<8x1xf32>
    %cst_35 = arith.constant 1.280000e+02 : f32
    %183 = vector.broadcast %cst_35 : f32 to vector<8x1xf32>
    %184 = arith.cmpf oge, %182, %183 : vector<8x1xf32>
    %185 = arith.select %184, %175, %170 : vector<8x1xi1>, vector<8x1xi32>
    %186 = arith.select %184, %171, %175 : vector<8x1xi1>, vector<8x1xi32>
    %187 = arith.subi %186, %185 : vector<8x1xi32>
    %c1_i32_36 = arith.constant 1 : i32
    %188 = vector.broadcast %c1_i32_36 : i32 to vector<8x1xi32>
    %189 = arith.shrsi %187, %188 : vector<8x1xi32>
    %190 = arith.addi %185, %189 : vector<8x1xi32>
    %191 = vector.broadcast %190 : vector<8x1xi32> to vector<8x256xi32>
    %192 = arith.cmpi sge, %3, %191 : vector<8x256xi32>
    %193 = arith.extui %192 : vector<8x256xi1> to vector<8x256xi32>
    %194 = arith.sitofp %193 : vector<8x256xi32> to vector<8x256xf32>
    %195 = arith.truncf %194 : vector<8x256xf32> to vector<8x256xbf16>
    %cst_37 = arith.constant dense<0.000000e+00> : vector<8x128xf32>
    %196 = tpu.matmul %195, %4, %cst_37 {dimension_numbers = #tpu.dot_dimension_numbers<[1], [0], [0], [1], [0, 0, 1, 1], [], []>} : vector<8x256xbf16>, vector<256x128xbf16>, vector<8x128xf32> -> vector<8x128xf32>
    %197 = vector.extract_strided_slice %196 {offsets = [0, 0], sizes = [8, 1], strides = [1, 1]} : vector<8x128xf32> to vector<8x1xf32>
    %cst_38 = arith.constant 1.280000e+02 : f32
    %198 = vector.broadcast %cst_38 : f32 to vector<8x1xf32>
    %199 = arith.cmpf oge, %197, %198 : vector<8x1xf32>
    %200 = arith.select %199, %190, %185 : vector<8x1xi1>, vector<8x1xi32>
    %201 = arith.select %199, %186, %190 : vector<8x1xi1>, vector<8x1xi32>
    %202 = arith.subi %201, %200 : vector<8x1xi32>
    %c1_i32_39 = arith.constant 1 : i32
    %203 = vector.broadcast %c1_i32_39 : i32 to vector<8x1xi32>
    %204 = arith.shrsi %202, %203 : vector<8x1xi32>
    %205 = arith.addi %200, %204 : vector<8x1xi32>
    %206 = vector.broadcast %205 : vector<8x1xi32> to vector<8x256xi32>
    %207 = arith.cmpi sge, %3, %206 : vector<8x256xi32>
    %208 = arith.extui %207 : vector<8x256xi1> to vector<8x256xi32>
    %209 = arith.sitofp %208 : vector<8x256xi32> to vector<8x256xf32>
    %210 = arith.truncf %209 : vector<8x256xf32> to vector<8x256xbf16>
    %cst_40 = arith.constant dense<0.000000e+00> : vector<8x128xf32>
    %211 = tpu.matmul %210, %4, %cst_40 {dimension_numbers = #tpu.dot_dimension_numbers<[1], [0], [0], [1], [0, 0, 1, 1], [], []>} : vector<8x256xbf16>, vector<256x128xbf16>, vector<8x128xf32> -> vector<8x128xf32>
    %212 = vector.extract_strided_slice %211 {offsets = [0, 0], sizes = [8, 1], strides = [1, 1]} : vector<8x128xf32> to vector<8x1xf32>
    %cst_41 = arith.constant 1.280000e+02 : f32
    %213 = vector.broadcast %cst_41 : f32 to vector<8x1xf32>
    %214 = arith.cmpf oge, %212, %213 : vector<8x1xf32>
    %215 = arith.select %214, %205, %200 : vector<8x1xi1>, vector<8x1xi32>
    %216 = arith.select %214, %201, %205 : vector<8x1xi1>, vector<8x1xi32>
    %217 = arith.subi %216, %215 : vector<8x1xi32>
    %c1_i32_42 = arith.constant 1 : i32
    %218 = vector.broadcast %c1_i32_42 : i32 to vector<8x1xi32>
    %219 = arith.shrsi %217, %218 : vector<8x1xi32>
    %220 = arith.addi %215, %219 : vector<8x1xi32>
    %221 = vector.broadcast %220 : vector<8x1xi32> to vector<8x256xi32>
    %222 = arith.cmpi sge, %3, %221 : vector<8x256xi32>
    %223 = arith.extui %222 : vector<8x256xi1> to vector<8x256xi32>
    %224 = arith.sitofp %223 : vector<8x256xi32> to vector<8x256xf32>
    %225 = arith.truncf %224 : vector<8x256xf32> to vector<8x256xbf16>
    %cst_43 = arith.constant dense<0.000000e+00> : vector<8x128xf32>
    %226 = tpu.matmul %225, %4, %cst_43 {dimension_numbers = #tpu.dot_dimension_numbers<[1], [0], [0], [1], [0, 0, 1, 1], [], []>} : vector<8x256xbf16>, vector<256x128xbf16>, vector<8x128xf32> -> vector<8x128xf32>
    %227 = vector.extract_strided_slice %226 {offsets = [0, 0], sizes = [8, 1], strides = [1, 1]} : vector<8x128xf32> to vector<8x1xf32>
    %cst_44 = arith.constant 1.280000e+02 : f32
    %228 = vector.broadcast %cst_44 : f32 to vector<8x1xf32>
    %229 = arith.cmpf oge, %227, %228 : vector<8x1xf32>
    %230 = arith.select %229, %220, %215 : vector<8x1xi1>, vector<8x1xi32>
    %231 = arith.select %229, %216, %220 : vector<8x1xi1>, vector<8x1xi32>
    %232 = arith.subi %231, %230 : vector<8x1xi32>
    %c1_i32_45 = arith.constant 1 : i32
    %233 = vector.broadcast %c1_i32_45 : i32 to vector<8x1xi32>
    %234 = arith.shrsi %232, %233 : vector<8x1xi32>
    %235 = arith.addi %230, %234 : vector<8x1xi32>
    %236 = vector.broadcast %235 : vector<8x1xi32> to vector<8x256xi32>
    %237 = arith.cmpi sge, %3, %236 : vector<8x256xi32>
    %238 = arith.extui %237 : vector<8x256xi1> to vector<8x256xi32>
    %239 = arith.sitofp %238 : vector<8x256xi32> to vector<8x256xf32>
    %240 = arith.truncf %239 : vector<8x256xf32> to vector<8x256xbf16>
    %cst_46 = arith.constant dense<0.000000e+00> : vector<8x128xf32>
    %241 = tpu.matmul %240, %4, %cst_46 {dimension_numbers = #tpu.dot_dimension_numbers<[1], [0], [0], [1], [0, 0, 1, 1], [], []>} : vector<8x256xbf16>, vector<256x128xbf16>, vector<8x128xf32> -> vector<8x128xf32>
    %242 = vector.extract_strided_slice %241 {offsets = [0, 0], sizes = [8, 1], strides = [1, 1]} : vector<8x128xf32> to vector<8x1xf32>
    %cst_47 = arith.constant 1.280000e+02 : f32
    %243 = vector.broadcast %cst_47 : f32 to vector<8x1xf32>
    %244 = arith.cmpf oge, %242, %243 : vector<8x1xf32>
    %245 = arith.select %244, %235, %230 : vector<8x1xi1>, vector<8x1xi32>
    %246 = arith.select %244, %231, %235 : vector<8x1xi1>, vector<8x1xi32>
    %247 = arith.subi %246, %245 : vector<8x1xi32>
    %c1_i32_48 = arith.constant 1 : i32
    %248 = vector.broadcast %c1_i32_48 : i32 to vector<8x1xi32>
    %249 = arith.shrsi %247, %248 : vector<8x1xi32>
    %250 = arith.addi %245, %249 : vector<8x1xi32>
    %251 = vector.broadcast %250 : vector<8x1xi32> to vector<8x256xi32>
    %252 = arith.cmpi sge, %3, %251 : vector<8x256xi32>
    %253 = arith.extui %252 : vector<8x256xi1> to vector<8x256xi32>
    %254 = arith.sitofp %253 : vector<8x256xi32> to vector<8x256xf32>
    %255 = arith.truncf %254 : vector<8x256xf32> to vector<8x256xbf16>
    %cst_49 = arith.constant dense<0.000000e+00> : vector<8x128xf32>
    %256 = tpu.matmul %255, %4, %cst_49 {dimension_numbers = #tpu.dot_dimension_numbers<[1], [0], [0], [1], [0, 0, 1, 1], [], []>} : vector<8x256xbf16>, vector<256x128xbf16>, vector<8x128xf32> -> vector<8x128xf32>
    %257 = vector.extract_strided_slice %256 {offsets = [0, 0], sizes = [8, 1], strides = [1, 1]} : vector<8x128xf32> to vector<8x1xf32>
    %cst_50 = arith.constant 1.280000e+02 : f32
    %258 = vector.broadcast %cst_50 : f32 to vector<8x1xf32>
    %259 = arith.cmpf oge, %257, %258 : vector<8x1xf32>
    %260 = arith.select %259, %250, %245 : vector<8x1xi1>, vector<8x1xi32>
    %261 = arith.select %259, %246, %250 : vector<8x1xi1>, vector<8x1xi32>
    %262 = arith.subi %261, %260 : vector<8x1xi32>
    %c1_i32_51 = arith.constant 1 : i32
    %263 = vector.broadcast %c1_i32_51 : i32 to vector<8x1xi32>
    %264 = arith.shrsi %262, %263 : vector<8x1xi32>
    %265 = arith.addi %260, %264 : vector<8x1xi32>
    %266 = vector.broadcast %265 : vector<8x1xi32> to vector<8x256xi32>
    %267 = arith.cmpi sge, %3, %266 : vector<8x256xi32>
    %268 = arith.extui %267 : vector<8x256xi1> to vector<8x256xi32>
    %269 = arith.sitofp %268 : vector<8x256xi32> to vector<8x256xf32>
    %270 = arith.truncf %269 : vector<8x256xf32> to vector<8x256xbf16>
    %cst_52 = arith.constant dense<0.000000e+00> : vector<8x128xf32>
    %271 = tpu.matmul %270, %4, %cst_52 {dimension_numbers = #tpu.dot_dimension_numbers<[1], [0], [0], [1], [0, 0, 1, 1], [], []>} : vector<8x256xbf16>, vector<256x128xbf16>, vector<8x128xf32> -> vector<8x128xf32>
    %272 = vector.extract_strided_slice %271 {offsets = [0, 0], sizes = [8, 1], strides = [1, 1]} : vector<8x128xf32> to vector<8x1xf32>
    %cst_53 = arith.constant 1.280000e+02 : f32
    %273 = vector.broadcast %cst_53 : f32 to vector<8x1xf32>
    %274 = arith.cmpf oge, %272, %273 : vector<8x1xf32>
    %275 = arith.select %274, %265, %260 : vector<8x1xi1>, vector<8x1xi32>
    %276 = arith.select %274, %261, %265 : vector<8x1xi1>, vector<8x1xi32>
    %277 = arith.subi %276, %275 : vector<8x1xi32>
    %c1_i32_54 = arith.constant 1 : i32
    %278 = vector.broadcast %c1_i32_54 : i32 to vector<8x1xi32>
    %279 = arith.shrsi %277, %278 : vector<8x1xi32>
    %280 = arith.addi %275, %279 : vector<8x1xi32>
    %281 = vector.broadcast %280 : vector<8x1xi32> to vector<8x256xi32>
    %282 = arith.cmpi sge, %3, %281 : vector<8x256xi32>
    %283 = arith.extui %282 : vector<8x256xi1> to vector<8x256xi32>
    %284 = arith.sitofp %283 : vector<8x256xi32> to vector<8x256xf32>
    %285 = arith.truncf %284 : vector<8x256xf32> to vector<8x256xbf16>
    %cst_55 = arith.constant dense<0.000000e+00> : vector<8x128xf32>
    %286 = tpu.matmul %285, %4, %cst_55 {dimension_numbers = #tpu.dot_dimension_numbers<[1], [0], [0], [1], [0, 0, 1, 1], [], []>} : vector<8x256xbf16>, vector<256x128xbf16>, vector<8x128xf32> -> vector<8x128xf32>
    %287 = vector.extract_strided_slice %286 {offsets = [0, 0], sizes = [8, 1], strides = [1, 1]} : vector<8x128xf32> to vector<8x1xf32>
    %cst_56 = arith.constant 1.280000e+02 : f32
    %288 = vector.broadcast %cst_56 : f32 to vector<8x1xf32>
    %289 = arith.cmpf oge, %287, %288 : vector<8x1xf32>
    %290 = arith.select %289, %280, %275 : vector<8x1xi1>, vector<8x1xi32>
    %291 = arith.select %289, %276, %280 : vector<8x1xi1>, vector<8x1xi32>
    %292 = arith.subi %291, %290 : vector<8x1xi32>
    %c1_i32_57 = arith.constant 1 : i32
    %293 = vector.broadcast %c1_i32_57 : i32 to vector<8x1xi32>
    %294 = arith.shrsi %292, %293 : vector<8x1xi32>
    %295 = arith.addi %290, %294 : vector<8x1xi32>
    %296 = vector.broadcast %295 : vector<8x1xi32> to vector<8x256xi32>
    %297 = arith.cmpi sge, %3, %296 : vector<8x256xi32>
    %298 = arith.extui %297 : vector<8x256xi1> to vector<8x256xi32>
    %299 = arith.sitofp %298 : vector<8x256xi32> to vector<8x256xf32>
    %300 = arith.truncf %299 : vector<8x256xf32> to vector<8x256xbf16>
    %cst_58 = arith.constant dense<0.000000e+00> : vector<8x128xf32>
    %301 = tpu.matmul %300, %4, %cst_58 {dimension_numbers = #tpu.dot_dimension_numbers<[1], [0], [0], [1], [0, 0, 1, 1], [], []>} : vector<8x256xbf16>, vector<256x128xbf16>, vector<8x128xf32> -> vector<8x128xf32>
    %302 = vector.extract_strided_slice %301 {offsets = [0, 0], sizes = [8, 1], strides = [1, 1]} : vector<8x128xf32> to vector<8x1xf32>
    %cst_59 = arith.constant 1.280000e+02 : f32
    %303 = vector.broadcast %cst_59 : f32 to vector<8x1xf32>
    %304 = arith.cmpf oge, %302, %303 : vector<8x1xf32>
    %305 = arith.select %304, %295, %290 : vector<8x1xi1>, vector<8x1xi32>
    %306 = arith.select %304, %291, %295 : vector<8x1xi1>, vector<8x1xi32>
    %307 = arith.subi %306, %305 : vector<8x1xi32>
    %c1_i32_60 = arith.constant 1 : i32
    %308 = vector.broadcast %c1_i32_60 : i32 to vector<8x1xi32>
    %309 = arith.shrsi %307, %308 : vector<8x1xi32>
    %310 = arith.addi %305, %309 : vector<8x1xi32>
    %311 = vector.broadcast %310 : vector<8x1xi32> to vector<8x256xi32>
    %312 = arith.cmpi sge, %3, %311 : vector<8x256xi32>
    %313 = arith.extui %312 : vector<8x256xi1> to vector<8x256xi32>
    %314 = arith.sitofp %313 : vector<8x256xi32> to vector<8x256xf32>
    %315 = arith.truncf %314 : vector<8x256xf32> to vector<8x256xbf16>
    %cst_61 = arith.constant dense<0.000000e+00> : vector<8x128xf32>
    %316 = tpu.matmul %315, %4, %cst_61 {dimension_numbers = #tpu.dot_dimension_numbers<[1], [0], [0], [1], [0, 0, 1, 1], [], []>} : vector<8x256xbf16>, vector<256x128xbf16>, vector<8x128xf32> -> vector<8x128xf32>
    %317 = vector.extract_strided_slice %316 {offsets = [0, 0], sizes = [8, 1], strides = [1, 1]} : vector<8x128xf32> to vector<8x1xf32>
    %cst_62 = arith.constant 1.280000e+02 : f32
    %318 = vector.broadcast %cst_62 : f32 to vector<8x1xf32>
    %319 = arith.cmpf oge, %317, %318 : vector<8x1xf32>
    %320 = arith.select %319, %310, %305 : vector<8x1xi1>, vector<8x1xi32>
    %321 = arith.select %319, %306, %310 : vector<8x1xi1>, vector<8x1xi32>
    %322 = arith.subi %321, %320 : vector<8x1xi32>
    %c1_i32_63 = arith.constant 1 : i32
    %323 = vector.broadcast %c1_i32_63 : i32 to vector<8x1xi32>
    %324 = arith.shrsi %322, %323 : vector<8x1xi32>
    %325 = arith.addi %320, %324 : vector<8x1xi32>
    %326 = vector.broadcast %325 : vector<8x1xi32> to vector<8x256xi32>
    %327 = arith.cmpi sge, %3, %326 : vector<8x256xi32>
    %328 = arith.extui %327 : vector<8x256xi1> to vector<8x256xi32>
    %329 = arith.sitofp %328 : vector<8x256xi32> to vector<8x256xf32>
    %330 = arith.truncf %329 : vector<8x256xf32> to vector<8x256xbf16>
    %cst_64 = arith.constant dense<0.000000e+00> : vector<8x128xf32>
    %331 = tpu.matmul %330, %4, %cst_64 {dimension_numbers = #tpu.dot_dimension_numbers<[1], [0], [0], [1], [0, 0, 1, 1], [], []>} : vector<8x256xbf16>, vector<256x128xbf16>, vector<8x128xf32> -> vector<8x128xf32>
    %332 = vector.extract_strided_slice %331 {offsets = [0, 0], sizes = [8, 1], strides = [1, 1]} : vector<8x128xf32> to vector<8x1xf32>
    %cst_65 = arith.constant 1.280000e+02 : f32
    %333 = vector.broadcast %cst_65 : f32 to vector<8x1xf32>
    %334 = arith.cmpf oge, %332, %333 : vector<8x1xf32>
    %335 = arith.select %334, %325, %320 : vector<8x1xi1>, vector<8x1xi32>
    %336 = arith.select %334, %321, %325 : vector<8x1xi1>, vector<8x1xi32>
    %337 = arith.subi %336, %335 : vector<8x1xi32>
    %c1_i32_66 = arith.constant 1 : i32
    %338 = vector.broadcast %c1_i32_66 : i32 to vector<8x1xi32>
    %339 = arith.shrsi %337, %338 : vector<8x1xi32>
    %340 = arith.addi %335, %339 : vector<8x1xi32>
    %341 = vector.broadcast %340 : vector<8x1xi32> to vector<8x256xi32>
    %342 = arith.cmpi sge, %3, %341 : vector<8x256xi32>
    %343 = arith.extui %342 : vector<8x256xi1> to vector<8x256xi32>
    %344 = arith.sitofp %343 : vector<8x256xi32> to vector<8x256xf32>
    %345 = arith.truncf %344 : vector<8x256xf32> to vector<8x256xbf16>
    %cst_67 = arith.constant dense<0.000000e+00> : vector<8x128xf32>
    %346 = tpu.matmul %345, %4, %cst_67 {dimension_numbers = #tpu.dot_dimension_numbers<[1], [0], [0], [1], [0, 0, 1, 1], [], []>} : vector<8x256xbf16>, vector<256x128xbf16>, vector<8x128xf32> -> vector<8x128xf32>
    %347 = vector.extract_strided_slice %346 {offsets = [0, 0], sizes = [8, 1], strides = [1, 1]} : vector<8x128xf32> to vector<8x1xf32>
    %cst_68 = arith.constant 1.280000e+02 : f32
    %348 = vector.broadcast %cst_68 : f32 to vector<8x1xf32>
    %349 = arith.cmpf oge, %347, %348 : vector<8x1xf32>
    %350 = arith.select %349, %340, %335 : vector<8x1xi1>, vector<8x1xi32>
    %351 = arith.select %349, %336, %340 : vector<8x1xi1>, vector<8x1xi32>
    %352 = arith.subi %351, %350 : vector<8x1xi32>
    %c1_i32_69 = arith.constant 1 : i32
    %353 = vector.broadcast %c1_i32_69 : i32 to vector<8x1xi32>
    %354 = arith.shrsi %352, %353 : vector<8x1xi32>
    %355 = arith.addi %350, %354 : vector<8x1xi32>
    %356 = vector.broadcast %355 : vector<8x1xi32> to vector<8x256xi32>
    %357 = arith.cmpi sge, %3, %356 : vector<8x256xi32>
    %358 = arith.extui %357 : vector<8x256xi1> to vector<8x256xi32>
    %359 = arith.sitofp %358 : vector<8x256xi32> to vector<8x256xf32>
    %360 = arith.truncf %359 : vector<8x256xf32> to vector<8x256xbf16>
    %cst_70 = arith.constant dense<0.000000e+00> : vector<8x128xf32>
    %361 = tpu.matmul %360, %4, %cst_70 {dimension_numbers = #tpu.dot_dimension_numbers<[1], [0], [0], [1], [0, 0, 1, 1], [], []>} : vector<8x256xbf16>, vector<256x128xbf16>, vector<8x128xf32> -> vector<8x128xf32>
    %362 = vector.extract_strided_slice %361 {offsets = [0, 0], sizes = [8, 1], strides = [1, 1]} : vector<8x128xf32> to vector<8x1xf32>
    %cst_71 = arith.constant 1.280000e+02 : f32
    %363 = vector.broadcast %cst_71 : f32 to vector<8x1xf32>
    %364 = arith.cmpf oge, %362, %363 : vector<8x1xf32>
    %365 = arith.select %364, %355, %350 : vector<8x1xi1>, vector<8x1xi32>
    %366 = arith.select %364, %351, %355 : vector<8x1xi1>, vector<8x1xi32>
    %367 = arith.subi %366, %365 : vector<8x1xi32>
    %c1_i32_72 = arith.constant 1 : i32
    %368 = vector.broadcast %c1_i32_72 : i32 to vector<8x1xi32>
    %369 = arith.shrsi %367, %368 : vector<8x1xi32>
    %370 = arith.addi %365, %369 : vector<8x1xi32>
    %371 = vector.broadcast %370 : vector<8x1xi32> to vector<8x256xi32>
    %372 = arith.cmpi sge, %3, %371 : vector<8x256xi32>
    %373 = arith.extui %372 : vector<8x256xi1> to vector<8x256xi32>
    %374 = arith.sitofp %373 : vector<8x256xi32> to vector<8x256xf32>
    %375 = arith.truncf %374 : vector<8x256xf32> to vector<8x256xbf16>
    %cst_73 = arith.constant dense<0.000000e+00> : vector<8x128xf32>
    %376 = tpu.matmul %375, %4, %cst_73 {dimension_numbers = #tpu.dot_dimension_numbers<[1], [0], [0], [1], [0, 0, 1, 1], [], []>} : vector<8x256xbf16>, vector<256x128xbf16>, vector<8x128xf32> -> vector<8x128xf32>
    %377 = vector.extract_strided_slice %376 {offsets = [0, 0], sizes = [8, 1], strides = [1, 1]} : vector<8x128xf32> to vector<8x1xf32>
    %cst_74 = arith.constant 1.280000e+02 : f32
    %378 = vector.broadcast %cst_74 : f32 to vector<8x1xf32>
    %379 = arith.cmpf oge, %377, %378 : vector<8x1xf32>
    %380 = arith.select %379, %370, %365 : vector<8x1xi1>, vector<8x1xi32>
    %381 = arith.select %379, %366, %370 : vector<8x1xi1>, vector<8x1xi32>
    %382 = arith.subi %381, %380 : vector<8x1xi32>
    %c1_i32_75 = arith.constant 1 : i32
    %383 = vector.broadcast %c1_i32_75 : i32 to vector<8x1xi32>
    %384 = arith.shrsi %382, %383 : vector<8x1xi32>
    %385 = arith.addi %380, %384 : vector<8x1xi32>
    %386 = vector.broadcast %385 : vector<8x1xi32> to vector<8x256xi32>
    %387 = arith.cmpi sge, %3, %386 : vector<8x256xi32>
    %388 = arith.extui %387 : vector<8x256xi1> to vector<8x256xi32>
    %389 = arith.sitofp %388 : vector<8x256xi32> to vector<8x256xf32>
    %390 = arith.truncf %389 : vector<8x256xf32> to vector<8x256xbf16>
    %cst_76 = arith.constant dense<0.000000e+00> : vector<8x128xf32>
    %391 = tpu.matmul %390, %4, %cst_76 {dimension_numbers = #tpu.dot_dimension_numbers<[1], [0], [0], [1], [0, 0, 1, 1], [], []>} : vector<8x256xbf16>, vector<256x128xbf16>, vector<8x128xf32> -> vector<8x128xf32>
    %392 = vector.extract_strided_slice %391 {offsets = [0, 0], sizes = [8, 1], strides = [1, 1]} : vector<8x128xf32> to vector<8x1xf32>
    %cst_77 = arith.constant 1.280000e+02 : f32
    %393 = vector.broadcast %cst_77 : f32 to vector<8x1xf32>
    %394 = arith.cmpf oge, %392, %393 : vector<8x1xf32>
    %395 = arith.select %394, %385, %380 : vector<8x1xi1>, vector<8x1xi32>
    %396 = arith.select %394, %381, %385 : vector<8x1xi1>, vector<8x1xi32>
    %397 = arith.subi %396, %395 : vector<8x1xi32>
    %c1_i32_78 = arith.constant 1 : i32
    %398 = vector.broadcast %c1_i32_78 : i32 to vector<8x1xi32>
    %399 = arith.shrsi %397, %398 : vector<8x1xi32>
    %400 = arith.addi %395, %399 : vector<8x1xi32>
    %401 = vector.broadcast %400 : vector<8x1xi32> to vector<8x256xi32>
    %402 = arith.cmpi sge, %3, %401 : vector<8x256xi32>
    %403 = arith.extui %402 : vector<8x256xi1> to vector<8x256xi32>
    %404 = arith.sitofp %403 : vector<8x256xi32> to vector<8x256xf32>
    %405 = arith.truncf %404 : vector<8x256xf32> to vector<8x256xbf16>
    %cst_79 = arith.constant dense<0.000000e+00> : vector<8x128xf32>
    %406 = tpu.matmul %405, %4, %cst_79 {dimension_numbers = #tpu.dot_dimension_numbers<[1], [0], [0], [1], [0, 0, 1, 1], [], []>} : vector<8x256xbf16>, vector<256x128xbf16>, vector<8x128xf32> -> vector<8x128xf32>
    %407 = vector.extract_strided_slice %406 {offsets = [0, 0], sizes = [8, 1], strides = [1, 1]} : vector<8x128xf32> to vector<8x1xf32>
    %cst_80 = arith.constant 1.280000e+02 : f32
    %408 = vector.broadcast %cst_80 : f32 to vector<8x1xf32>
    %409 = arith.cmpf oge, %407, %408 : vector<8x1xf32>
    %410 = arith.select %409, %400, %395 : vector<8x1xi1>, vector<8x1xi32>
    %411 = arith.select %409, %396, %400 : vector<8x1xi1>, vector<8x1xi32>
    %412 = arith.subi %411, %410 : vector<8x1xi32>
    %c1_i32_81 = arith.constant 1 : i32
    %413 = vector.broadcast %c1_i32_81 : i32 to vector<8x1xi32>
    %414 = arith.shrsi %412, %413 : vector<8x1xi32>
    %415 = arith.addi %410, %414 : vector<8x1xi32>
    %416 = vector.broadcast %415 : vector<8x1xi32> to vector<8x256xi32>
    %417 = arith.cmpi sge, %3, %416 : vector<8x256xi32>
    %418 = arith.extui %417 : vector<8x256xi1> to vector<8x256xi32>
    %419 = arith.sitofp %418 : vector<8x256xi32> to vector<8x256xf32>
    %420 = arith.truncf %419 : vector<8x256xf32> to vector<8x256xbf16>
    %cst_82 = arith.constant dense<0.000000e+00> : vector<8x128xf32>
    %421 = tpu.matmul %420, %4, %cst_82 {dimension_numbers = #tpu.dot_dimension_numbers<[1], [0], [0], [1], [0, 0, 1, 1], [], []>} : vector<8x256xbf16>, vector<256x128xbf16>, vector<8x128xf32> -> vector<8x128xf32>
    %422 = vector.extract_strided_slice %421 {offsets = [0, 0], sizes = [8, 1], strides = [1, 1]} : vector<8x128xf32> to vector<8x1xf32>
    %cst_83 = arith.constant 1.280000e+02 : f32
    %423 = vector.broadcast %cst_83 : f32 to vector<8x1xf32>
    %424 = arith.cmpf oge, %422, %423 : vector<8x1xf32>
    %425 = arith.select %424, %415, %410 : vector<8x1xi1>, vector<8x1xi32>
    %426 = arith.select %424, %411, %415 : vector<8x1xi1>, vector<8x1xi32>
    %427 = arith.subi %426, %425 : vector<8x1xi32>
    %c1_i32_84 = arith.constant 1 : i32
    %428 = vector.broadcast %c1_i32_84 : i32 to vector<8x1xi32>
    %429 = arith.shrsi %427, %428 : vector<8x1xi32>
    %430 = arith.addi %425, %429 : vector<8x1xi32>
    %431 = vector.broadcast %430 : vector<8x1xi32> to vector<8x256xi32>
    %432 = arith.cmpi sge, %3, %431 : vector<8x256xi32>
    %433 = arith.extui %432 : vector<8x256xi1> to vector<8x256xi32>
    %434 = arith.sitofp %433 : vector<8x256xi32> to vector<8x256xf32>
    %435 = arith.truncf %434 : vector<8x256xf32> to vector<8x256xbf16>
    %cst_85 = arith.constant dense<0.000000e+00> : vector<8x128xf32>
    %436 = tpu.matmul %435, %4, %cst_85 {dimension_numbers = #tpu.dot_dimension_numbers<[1], [0], [0], [1], [0, 0, 1, 1], [], []>} : vector<8x256xbf16>, vector<256x128xbf16>, vector<8x128xf32> -> vector<8x128xf32>
    %437 = vector.extract_strided_slice %436 {offsets = [0, 0], sizes = [8, 1], strides = [1, 1]} : vector<8x128xf32> to vector<8x1xf32>
    %cst_86 = arith.constant 1.280000e+02 : f32
    %438 = vector.broadcast %cst_86 : f32 to vector<8x1xf32>
    %439 = arith.cmpf oge, %437, %438 : vector<8x1xf32>
    %440 = arith.select %439, %430, %425 : vector<8x1xi1>, vector<8x1xi32>
    %441 = arith.select %439, %426, %430 : vector<8x1xi1>, vector<8x1xi32>
    %442 = arith.subi %441, %440 : vector<8x1xi32>
    %c1_i32_87 = arith.constant 1 : i32
    %443 = vector.broadcast %c1_i32_87 : i32 to vector<8x1xi32>
    %444 = arith.shrsi %442, %443 : vector<8x1xi32>
    %445 = arith.addi %440, %444 : vector<8x1xi32>
    %446 = vector.broadcast %445 : vector<8x1xi32> to vector<8x256xi32>
    %447 = arith.cmpi sge, %3, %446 : vector<8x256xi32>
    %448 = arith.extui %447 : vector<8x256xi1> to vector<8x256xi32>
    %449 = arith.sitofp %448 : vector<8x256xi32> to vector<8x256xf32>
    %450 = arith.truncf %449 : vector<8x256xf32> to vector<8x256xbf16>
    %cst_88 = arith.constant dense<0.000000e+00> : vector<8x128xf32>
    %451 = tpu.matmul %450, %4, %cst_88 {dimension_numbers = #tpu.dot_dimension_numbers<[1], [0], [0], [1], [0, 0, 1, 1], [], []>} : vector<8x256xbf16>, vector<256x128xbf16>, vector<8x128xf32> -> vector<8x128xf32>
    %452 = vector.extract_strided_slice %451 {offsets = [0, 0], sizes = [8, 1], strides = [1, 1]} : vector<8x128xf32> to vector<8x1xf32>
    %cst_89 = arith.constant 1.280000e+02 : f32
    %453 = vector.broadcast %cst_89 : f32 to vector<8x1xf32>
    %454 = arith.cmpf oge, %452, %453 : vector<8x1xf32>
    %455 = arith.select %454, %445, %440 : vector<8x1xi1>, vector<8x1xi32>
    %456 = arith.select %454, %441, %445 : vector<8x1xi1>, vector<8x1xi32>
    %457 = arith.subi %456, %455 : vector<8x1xi32>
    %c1_i32_90 = arith.constant 1 : i32
    %458 = vector.broadcast %c1_i32_90 : i32 to vector<8x1xi32>
    %459 = arith.shrsi %457, %458 : vector<8x1xi32>
    %460 = arith.addi %455, %459 : vector<8x1xi32>
    %461 = vector.broadcast %460 : vector<8x1xi32> to vector<8x256xi32>
    %462 = arith.cmpi sge, %3, %461 : vector<8x256xi32>
    %463 = arith.extui %462 : vector<8x256xi1> to vector<8x256xi32>
    %464 = arith.sitofp %463 : vector<8x256xi32> to vector<8x256xf32>
    %465 = arith.truncf %464 : vector<8x256xf32> to vector<8x256xbf16>
    %cst_91 = arith.constant dense<0.000000e+00> : vector<8x128xf32>
    %466 = tpu.matmul %465, %4, %cst_91 {dimension_numbers = #tpu.dot_dimension_numbers<[1], [0], [0], [1], [0, 0, 1, 1], [], []>} : vector<8x256xbf16>, vector<256x128xbf16>, vector<8x128xf32> -> vector<8x128xf32>
    %467 = vector.extract_strided_slice %466 {offsets = [0, 0], sizes = [8, 1], strides = [1, 1]} : vector<8x128xf32> to vector<8x1xf32>
    %cst_92 = arith.constant 1.280000e+02 : f32
    %468 = vector.broadcast %cst_92 : f32 to vector<8x1xf32>
    %469 = arith.cmpf oge, %467, %468 : vector<8x1xf32>
    %470 = arith.select %469, %460, %455 : vector<8x1xi1>, vector<8x1xi32>
    %471 = vector.broadcast %470 : vector<8x1xi32> to vector<8x256xi32>
    %472 = arith.cmpi sge, %3, %471 : vector<8x256xi32>
    %cst_93 = arith.constant 0.000000e+00 : f32
    %473 = vector.broadcast %cst_93 : f32 to vector<8x256xf32>
    %474 = arith.select %472, %0, %473 : vector<8x256xi1>, vector<8x256xf32>
    %c0_94 = arith.constant 0 : index
    %c0_95 = arith.constant 0 : index
    %475 = vector.load %arg2[%c0_94, %c0_95] : memref<8x256xf32, #tpu.memory_space<vmem>>, vector<8x256xf32>
    tpu.vector_store %arg2[%c0_94, %c0_95], %474 {strides = array<i32>} : memref<8x256xf32, #tpu.memory_space<vmem>>, vector<8x256xf32>,
    return
  }
  func.func @transform_0(%arg0: i32) -> (i32, i32) {
    %c0_i32 = arith.constant 0 : i32
    %c0_i32_0 = arith.constant 0 : i32
    return %arg0, %c0_i32 : i32, i32
  }
  func.func @transform_1(%arg0: i32) -> (i32, i32) {
    %c0_i32 = arith.constant 0 : i32
    %c0_i32_0 = arith.constant 0 : i32
    return %arg0, %c0_i32 : i32, i32
  }
}

</mosaic_0001>

<bundles_post_ra>
// kernel: tpu_custom_call.1
= control target key start
LH: loop header
LB: loop body
LE: loop exit
PB: predicated region body
PF: predicated region fallthrough
CT: control target
= control target key end

     0   :  { %6 = vsyncpa [#allocation3], 0  ;;  %s2279_s0 = inlined_call_operand.hbm [shape: f32[8,256], index: 0, kind: input, shape index: {}]   ;;  %s2280_s1 = inlined_call_operand.hbm [shape: f32[8,256], index: 1, kind: output, shape index: {}]  }
   0x1   :  { %7 = vsyncpa [#allocation4], 0  ;;  %s13_s8 = sshll.u32 %s2279_s0, 4  ;;  %s1631_s9 = smov [#allocation2]   ;;  %s14_s8 = int_to_ptr.hbm [resolvable:$true] %s13_s8 }
   0x2   :  { %s15_s10 = sshll.u32 %s1631_s9, 4  ;;  %s16_s10 = int_to_ptr.vmem [resolvable:$true] %s15_s10 }
   0x3   :  { %18 = dma.hbm_to_vmem [thread:$0]  %s14_s8, 256, %s16_s10, [#allocation3]  }
   0x4   :  { %1627 = dma.done.wait [#allocation3], 256  }
   0x5   :  { %1628 = vsyncadd [#allocation3], 4294967040  ;;  %v1632_v0 = vmov 1065369472   ;;  %v24_v1 = vld [vmem:[#allocation2] sm:$0xff]  ;;  %v25_v2 = vld [vmem:[#allocation2 + $0x8] sm:$0xff] }
   0x6   :  { %38 = vmatpush.bf16.msra.mxu0 %v1632_v0  ;;  %51 = vmatpush.bf16.msra.mxu1 %v1632_v0  ;;  %v1670_v3 = vand.u32 2147483647, %v24_v1  ;;  %v1674_v4 = vand.u32 2147483647, %v25_v2  ;;  %v1633_v5 = vmov 1.0|1.0  }
   0x7   :  { %81 = vmatpush.bf16.msra.mxu2 %v1632_v0  ;;  %94 = vmatpush.bf16.msra.mxu3 %v1632_v0  ;;  %v1634_v6 = vmov 0   ;;  %v1635_v11 = vmov 1069547520   ;;  %s1636_s0 = smov [#allocation5]   ;;  %s1372_s14 = sshll.u32 %s2280_s1, 4  ;;  %s1373_s14 = int_to_ptr.hbm [resolvable:$true] %s1372_s14 }
   0x8   :  { %vm30_vm0 = vcmp.ge.s32.totalorder %v1670_v3, 1069547520  ;;  %vm31_vm1 = vcmp.ge.s32.totalorder %v1674_v4, 1069547520  ;;  %1574 = vset.pattern.permute.xlu0 %v1634_v6  ;;  %1575 = vset.pattern.permute.xlu1 %v1634_v6  ;;  %s1370_s11 = sshll.u32 %s1636_s0, 4  ;;  %s1371_s11 = int_to_ptr.vmem [resolvable:$true] %s1370_s11 }
   0x9   :  { %vm1384_vm2 = vmpackc.low %vm30_vm0, %vm30_vm0  ;;  %1576 = vset.pattern.permute.xlu2 %v1634_v6 }
   0xa   :  { %39 = vmatpush.bf16.msra.mxu0 %v1632_v0  ;;  %52 = vmatpush.bf16.msra.mxu1 %v1632_v0  ;;  %vm1386_vm3 = vmpackc.low %vm31_vm1, %vm31_vm1 }
   0xb   :  { %82 = vmatpush.bf16.msra.mxu2 %v1632_v0  ;;  %95 = vmatpush.bf16.msra.mxu3 %v1632_v0 }
   0xe   :  { %40 = vmatpush.bf16.msra.mxu0 %v1632_v0  ;;  %53 = vmatpush.bf16.msra.mxu1 %v1632_v0 }
   0xf   :  { %83 = vmatpush.bf16.msra.mxu2 %v1632_v0  ;;  %96 = vmatpush.bf16.msra.mxu3 %v1632_v0 }
  0x12   :  { %41 = vmatpush.bf16.msra.mxu0 %v1632_v0  ;;  %54 = vmatpush.bf16.msra.mxu1 %v1632_v0 }
  0x13   :  { %84 = vmatpush.bf16.msra.mxu2 %v1632_v0  ;;  %97 = vmatpush.bf16.msra.mxu3 %v1632_v0 }
  0x16   :  { %42 = vmatpush.bf16.msra.mxu0 %v1632_v0  ;;  %55 = vmatpush.bf16.msra.mxu1 %v1632_v0 }
  0x17   :  { %85 = vmatpush.bf16.msra.mxu2 %v1632_v0  ;;  %98 = vmatpush.bf16.msra.mxu3 %v1632_v0 }
  0x1a   :  { %43 = vmatpush.bf16.msra.mxu0 %v1632_v0  ;;  %56 = vmatpush.bf16.msra.mxu1 %v1632_v0 }
  0x1b   :  { %86 = vmatpush.bf16.msra.mxu2 %v1632_v0  ;;  %99 = vmatpush.bf16.msra.mxu3 %v1632_v0 }
  0x1e   :  { %44 = vmatpush.bf16.msra.mxu0 %v1632_v0  ;;  %57 = vmatpush.bf16.msra.mxu1 %v1632_v0 }
  0x1f   :  { %87 = vmatpush.bf16.msra.mxu2 %v1632_v0  ;;  %100 = vmatpush.bf16.msra.mxu3 %v1632_v0 }
  0x22   :  { %45 = vmatpush.bf16.msra.mxu0 %v1632_v0  ;;  %58 = vmatpush.bf16.msra.mxu1 %v1632_v0 }
  0x23   :  { %88 = vmatpush.bf16.msra.mxu2 %v1632_v0  ;;  %101 = vmatpush.bf16.msra.mxu3 %v1632_v0 }
  0x25   :  { %1385 = vmatmul.msk.bf16.vlgmr.msra.gmra.mxu0 %vm1384_vm2, %v1633_v5  ;;  %1387 = vmatmul.msk.bf16.vlgmr.msra.gmra.mxu1 %vm1386_vm3, %v1633_v5 }
  0x26   :  { %124 = vmatpush.bf16.msrb.mxu0 %v1632_v0  ;;  %137 = vmatpush.bf16.msrb.mxu1 %v1632_v0 }
  0x27   :  { %167 = vmatpush.bf16.msrb.mxu2 %v1632_v0  ;;  %180 = vmatpush.bf16.msrb.mxu3 %v1632_v0 }
  0x2a   :  { %125 = vmatpush.bf16.msrb.mxu0 %v1632_v0  ;;  %138 = vmatpush.bf16.msrb.mxu1 %v1632_v0 }
  0x2b   :  { %168 = vmatpush.bf16.msrb.mxu2 %v1632_v0  ;;  %181 = vmatpush.bf16.msrb.mxu3 %v1632_v0 }
  0x2e   :  { %126 = vmatpush.bf16.msrb.mxu0 %v1632_v0  ;;  %139 = vmatpush.bf16.msrb.mxu1 %v1632_v0 }
  0x2f   :  { %169 = vmatpush.bf16.msrb.mxu2 %v1632_v0  ;;  %182 = vmatpush.bf16.msrb.mxu3 %v1632_v0 }
  0x32   :  { %127 = vmatpush.bf16.msrb.mxu0 %v1632_v0  ;;  %140 = vmatpush.bf16.msrb.mxu1 %v1632_v0 }
  0x33   :  { %170 = vmatpush.bf16.msrb.mxu2 %v1632_v0  ;;  %183 = vmatpush.bf16.msrb.mxu3 %v1632_v0 }
  0x36   :  { %128 = vmatpush.bf16.msrb.mxu0 %v1632_v0  ;;  %141 = vmatpush.bf16.msrb.mxu1 %v1632_v0 }
  0x37   :  { %171 = vmatpush.bf16.msrb.mxu2 %v1632_v0  ;;  %184 = vmatpush.bf16.msrb.mxu3 %v1632_v0 }
  0x3a   :  { %129 = vmatpush.bf16.msrb.mxu0 %v1632_v0  ;;  %142 = vmatpush.bf16.msrb.mxu1 %v1632_v0 }
  0x3b   :  { %172 = vmatpush.bf16.msrb.mxu2 %v1632_v0  ;;  %185 = vmatpush.bf16.msrb.mxu3 %v1632_v0 }
  0x3e   :  { %130 = vmatpush.bf16.msrb.mxu0 %v1632_v0  ;;  %143 = vmatpush.bf16.msrb.mxu1 %v1632_v0 }
  0x3f   :  { %173 = vmatpush.bf16.msrb.mxu2 %v1632_v0  ;;  %186 = vmatpush.bf16.msrb.mxu3 %v1632_v0 }
  0x42   :  { %131 = vmatpush.bf16.msrb.mxu0 %v1632_v0  ;;  %144 = vmatpush.bf16.msrb.mxu1 %v1632_v0 }
  0x43   :  { %174 = vmatpush.bf16.msrb.mxu2 %v1632_v0  ;;  %187 = vmatpush.bf16.msrb.mxu3 %v1632_v0 }
  0x46   :  { %210 = vmatpush.bf16.msra.mxu0 %v1632_v0  ;;  %223 = vmatpush.bf16.msra.mxu1 %v1632_v0 }
  0x4a   :  { %211 = vmatpush.bf16.msra.mxu0 %v1632_v0  ;;  %224 = vmatpush.bf16.msra.mxu1 %v1632_v0 }
  0x4e   :  { %212 = vmatpush.bf16.msra.mxu0 %v1632_v0  ;;  %225 = vmatpush.bf16.msra.mxu1 %v1632_v0 }
  0x52   :  { %213 = vmatpush.bf16.msra.mxu0 %v1632_v0  ;;  %226 = vmatpush.bf16.msra.mxu1 %v1632_v0 }
  0x56   :  { %214 = vmatpush.bf16.msra.mxu0 %v1632_v0  ;;  %227 = vmatpush.bf16.msra.mxu1 %v1632_v0 }
  0x5a   :  { %215 = vmatpush.bf16.msra.mxu0 %v1632_v0  ;;  %228 = vmatpush.bf16.msra.mxu1 %v1632_v0 }
  0x5e   :  { %216 = vmatpush.bf16.msra.mxu0 %v1632_v0  ;;  %229 = vmatpush.bf16.msra.mxu1 %v1632_v0 }
  0x62   :  { %217 = vmatpush.bf16.msra.mxu0 %v1632_v0  ;;  %230 = vmatpush.bf16.msra.mxu1 %v1632_v0 }
  0xa2   :  { %v47_v7 = vpop.f32.mrf.mxu0  ;;  %v60_v8 = vpop.f32.mrf.mxu1 }
  0xa3   :  { %v61_v9 = vadd.f32 %v60_v8, %v47_v7 }
  0xa5   :  { %vm64_vm4 = vcmp.ge.f32.partialorder %v61_v9, 128.0 }
  0xa6   :  { %v65_v10 = vsel %vm64_vm4, 1069547520, %v1634_v6  ;;  %v66_v12 = vsel %vm64_vm4, 2139095041, %v1635_v11 }
  0xa7   :  { %v67_v13 = vsub.s32 %v66_v12, %v65_v10 }
  0xa9   :  { %v68_v14 = vshra.s32 %v67_v13, 1 }
  0xaa   :  { %v49_v15 = vpop.f32.mrf.mxu0  ;;  %v62_v16 = vpop.f32.mrf.mxu1 }
  0xab   :  { %v69_v17 = vadd.s32 %v68_v14, %v65_v10 }
  0xad   :  { %71 = vperm.xlu0 %1574, %v69_v17  }
 0x11f   :  { %v72_v18 = vpop.permute.xlu0 %71 }
 0x120   :  { %vm73_vm5 = vcmp.ge.s32.totalorder %v1670_v3, %v72_v18  ;;  %vm74_vm6 = vcmp.ge.s32.totalorder %v1674_v4, %v72_v18 }
 0x121   :  { %vm1390_vm7 = vmpackc.low %vm73_vm5, %vm73_vm5 }
 0x122   :  { %1391 = vmatmul.msk.bf16.vlgmr.msra.gmra.mxu2 %vm1390_vm7, %v1633_v5  ;;  %vm1392_vm8 = vmpackc.low %vm74_vm6, %vm74_vm6 }
 0x123   :  { %1393 = vmatmul.msk.bf16.vlgmr.msra.gmra.mxu3 %vm1392_vm8, %v1633_v5  ;;  %253 = vmatpush.bf16.msra.mxu2 %v1632_v0 }
 0x124   :  { %266 = vmatpush.bf16.msra.mxu3 %v1632_v0 }
 0x127   :  { %254 = vmatpush.bf16.msra.mxu2 %v1632_v0 }
 0x128   :  { %267 = vmatpush.bf16.msra.mxu3 %v1632_v0 }
 0x12b   :  { %255 = vmatpush.bf16.msra.mxu2 %v1632_v0 }
 0x12c   :  { %268 = vmatpush.bf16.msra.mxu3 %v1632_v0 }
 0x12f   :  { %256 = vmatpush.bf16.msra.mxu2 %v1632_v0 }
 0x130   :  { %269 = vmatpush.bf16.msra.mxu3 %v1632_v0 }
 0x133   :  { %257 = vmatpush.bf16.msra.mxu2 %v1632_v0 }
 0x134   :  { %270 = vmatpush.bf16.msra.mxu3 %v1632_v0 }
 0x137   :  { %258 = vmatpush.bf16.msra.mxu2 %v1632_v0 }
 0x138   :  { %271 = vmatpush.bf16.msra.mxu3 %v1632_v0 }
 0x13b   :  { %259 = vmatpush.bf16.msra.mxu2 %v1632_v0 }
 0x13c   :  { %272 = vmatpush.bf16.msra.mxu3 %v1632_v0 }
 0x13f   :  { %260 = vmatpush.bf16.msra.mxu2 %v1632_v0 }
 0x140   :  { %273 = vmatpush.bf16.msra.mxu3 %v1632_v0 }
 0x1a5   :  { %v90_v19 = vpop.f32.mrf.mxu2 }
 0x1a6   :  { %v103_v20 = vpop.f32.mrf.mxu3 }
 0x1a7   :  { %v104_v21 = vadd.f32 %v103_v20, %v90_v19 }
 0x1a9   :  { %vm107_vm9 = vcmp.ge.f32.partialorder %v104_v21, 128.0 }
 0x1aa   :  { %v108_v22 = vsel %vm107_vm9, %v69_v17, %v65_v10  ;;  %v109_v23 = vsel %vm107_vm9, %v66_v12, %v69_v17 }
 0x1ab   :  { %v110_v24 = vsub.s32 %v109_v23, %v108_v22 }
 0x1ad   :  { %v111_v25 = vshra.s32 %v110_v24, 1  ;;  %v92_v26 = vpop.f32.mrf.mxu2 }
 0x1ae   :  { %v105_v27 = vpop.f32.mrf.mxu3 }
 0x1af   :  { %v112_v28 = vadd.s32 %v111_v25, %v108_v22 }
 0x1b1   :  { %114 = vperm.xlu0 %1574, %v112_v28  }
 0x223   :  { %v115_v29 = vpop.permute.xlu0 %114 }
 0x224   :  { %vm116_vm10 = vcmp.ge.s32.totalorder %v1670_v3, %v115_v29  ;;  %vm117_vm11 = vcmp.ge.s32.totalorder %v1674_v4, %v115_v29 }
 0x225   :  { %vm1396_vm12 = vmpackc.low %vm116_vm10, %vm116_vm10 }
 0x226   :  { %vm1398_vm13 = vmpackc.low %vm117_vm11, %vm117_vm11  ;;  %1397 = vmatmul.msk.bf16.vlgmr.msrb.gmra.mxu0 %vm1396_vm12, %v1633_v5 }
 0x227   :  { %1399 = vmatmul.msk.bf16.vlgmr.msrb.gmra.mxu1 %vm1398_vm13, %v1633_v5  ;;  %296 = vmatpush.bf16.msrb.mxu0 %v1632_v0 }
 0x228   :  { %309 = vmatpush.bf16.msrb.mxu1 %v1632_v0 }
 0x22b   :  { %297 = vmatpush.bf16.msrb.mxu0 %v1632_v0 }
 0x22c   :  { %310 = vmatpush.bf16.msrb.mxu1 %v1632_v0 }
 0x22f   :  { %298 = vmatpush.bf16.msrb.mxu0 %v1632_v0 }
 0x230   :  { %311 = vmatpush.bf16.msrb.mxu1 %v1632_v0 }
 0x233   :  { %299 = vmatpush.bf16.msrb.mxu0 %v1632_v0 }
 0x234   :  { %312 = vmatpush.bf16.msrb.mxu1 %v1632_v0 }
 0x237   :  { %300 = vmatpush.bf16.msrb.mxu0 %v1632_v0 }
 0x238   :  { %313 = vmatpush.bf16.msrb.mxu1 %v1632_v0 }
 0x23b   :  { %301 = vmatpush.bf16.msrb.mxu0 %v1632_v0 }
 0x23c   :  { %314 = vmatpush.bf16.msrb.mxu1 %v1632_v0 }
 0x23f   :  { %302 = vmatpush.bf16.msrb.mxu0 %v1632_v0 }
 0x240   :  { %315 = vmatpush.bf16.msrb.mxu1 %v1632_v0 }
 0x243   :  { %303 = vmatpush.bf16.msrb.mxu0 %v1632_v0 }
 0x244   :  { %316 = vmatpush.bf16.msrb.mxu1 %v1632_v0 }
 0x2a3   :  { %v133_v30 = vpop.f32.mrf.mxu0 }
 0x2a4   :  { %v146_v31 = vpop.f32.mrf.mxu1 }
 0x2a5   :  { %v147_v32 = vadd.f32 %v146_v31, %v133_v30 }
 0x2a7   :  { %vm150_vm14 = vcmp.ge.f32.partialorder %v147_v32, 128.0 }
 0x2a8   :  { %v151_v33 = vsel %vm150_vm14, %v112_v28, %v108_v22  ;;  %v152_v34 = vsel %vm150_vm14, %v109_v23, %v112_v28 }
 0x2a9   :  { %v153_v35 = vsub.s32 %v152_v34, %v151_v33 }
 0x2ab   :  { %v154_v36 = vshra.s32 %v153_v35, 1  ;;  %v135_v37 = vpop.f32.mrf.mxu0 }
 0x2ac   :  { %v148_v38 = vpop.f32.mrf.mxu1 }
 0x2ad   :  { %v155_v39 = vadd.s32 %v154_v36, %v151_v33 }
 0x2af   :  { %157 = vperm.xlu1 %1575, %v155_v39  }
 0x321   :  { %v158_v40 = vpop.permute.xlu1 %157 }
 0x322   :  { %vm159_vm15 = vcmp.ge.s32.totalorder %v1670_v3, %v158_v40  ;;  %vm160_vm0 = vcmp.ge.s32.totalorder %v1674_v4, %v158_v40 }
 0x323   :  { %vm1402_vm1 = vmpackc.low %vm159_vm15, %vm159_vm15 }
 0x324   :  { %vm1404_vm2 = vmpackc.low %vm160_vm0, %vm160_vm0  ;;  %1403 = vmatmul.msk.bf16.vlgmr.msrb.gmra.mxu2 %vm1402_vm1, %v1633_v5 }
 0x325   :  { %1405 = vmatmul.msk.bf16.vlgmr.msrb.gmra.mxu3 %vm1404_vm2, %v1633_v5  ;;  %339 = vmatpush.bf16.msrb.mxu2 %v1632_v0 }
 0x326   :  { %352 = vmatpush.bf16.msrb.mxu3 %v1632_v0 }
 0x329   :  { %340 = vmatpush.bf16.msrb.mxu2 %v1632_v0 }
 0x32a   :  { %353 = vmatpush.bf16.msrb.mxu3 %v1632_v0 }
 0x32d   :  { %341 = vmatpush.bf16.msrb.mxu2 %v1632_v0 }
 0x32e   :  { %354 = vmatpush.bf16.msrb.mxu3 %v1632_v0 }
 0x331   :  { %342 = vmatpush.bf16.msrb.mxu2 %v1632_v0 }
 0x332   :  { %355 = vmatpush.bf16.msrb.mxu3 %v1632_v0 }
 0x335   :  { %343 = vmatpush.bf16.msrb.mxu2 %v1632_v0 }
 0x336   :  { %356 = vmatpush.bf16.msrb.mxu3 %v1632_v0 }
 0x339   :  { %344 = vmatpush.bf16.msrb.mxu2 %v1632_v0 }
 0x33a   :  { %357 = vmatpush.bf16.msrb.mxu3 %v1632_v0 }
 0x33d   :  { %345 = vmatpush.bf16.msrb.mxu2 %v1632_v0 }
 0x33e   :  { %358 = vmatpush.bf16.msrb.mxu3 %v1632_v0 }
 0x341   :  { %346 = vmatpush.bf16.msrb.mxu2 %v1632_v0 }
 0x342   :  { %359 = vmatpush.bf16.msrb.mxu3 %v1632_v0 }
 0x3a7   :  { %v176_v41 = vpop.f32.mrf.mxu2 }
 0x3a8   :  { %v189_v42 = vpop.f32.mrf.mxu3 }
 0x3a9   :  { %v190_v43 = vadd.f32 %v189_v42, %v176_v41 }
 0x3ab   :  { %vm193_vm3 = vcmp.ge.f32.partialorder %v190_v43, 128.0 }
 0x3ac   :  { %v194_v44 = vsel %vm193_vm3, %v155_v39, %v151_v33  ;;  %v195_v45 = vsel %vm193_vm3, %v152_v34, %v155_v39 }
 0x3ad   :  { %v196_v46 = vsub.s32 %v195_v45, %v194_v44 }
 0x3af   :  { %v197_v47 = vshra.s32 %v196_v46, 1  ;;  %v178_v48 = vpop.f32.mrf.mxu2 }
 0x3b0   :  { %v191_v49 = vpop.f32.mrf.mxu3 }
 0x3b1   :  { %v198_v50 = vadd.s32 %v197_v47, %v194_v44 }
 0x3b3   :  { %200 = vperm.xlu1 %1575, %v198_v50  }
 0x425   :  { %v201_v51 = vpop.permute.xlu1 %200 }
 0x426   :  { %vm202_vm4 = vcmp.ge.s32.totalorder %v1670_v3, %v201_v51  ;;  %vm203_vm5 = vcmp.ge.s32.totalorder %v1674_v4, %v201_v51 }
 0x427   :  { %vm1408_vm6 = vmpackc.low %vm202_vm4, %vm202_vm4 }
 0x428   :  { %vm1410_vm7 = vmpackc.low %vm203_vm5, %vm203_vm5  ;;  %1409 = vmatmul.msk.bf16.vlgmr.msra.gmra.mxu0 %vm1408_vm6, %v1633_v5 }
 0x429   :  { %1411 = vmatmul.msk.bf16.vlgmr.msra.gmra.mxu1 %vm1410_vm7, %v1633_v5  ;;  %382 = vmatpush.bf16.msra.mxu0 %v1632_v0 }
 0x42a   :  { %395 = vmatpush.bf16.msra.mxu1 %v1632_v0 }
 0x42d   :  { %383 = vmatpush.bf16.msra.mxu0 %v1632_v0 }
 0x42e   :  { %396 = vmatpush.bf16.msra.mxu1 %v1632_v0 }
 0x431   :  { %384 = vmatpush.bf16.msra.mxu0 %v1632_v0 }
 0x432   :  { %397 = vmatpush.bf16.msra.mxu1 %v1632_v0 }
 0x435   :  { %385 = vmatpush.bf16.msra.mxu0 %v1632_v0 }
 0x436   :  { %398 = vmatpush.bf16.msra.mxu1 %v1632_v0 }
 0x439   :  { %386 = vmatpush.bf16.msra.mxu0 %v1632_v0 }
 0x43a   :  { %399 = vmatpush.bf16.msra.mxu1 %v1632_v0 }
 0x43d   :  { %387 = vmatpush.bf16.msra.mxu0 %v1632_v0 }
 0x43e   :  { %400 = vmatpush.bf16.msra.mxu1 %v1632_v0 }
 0x441   :  { %388 = vmatpush.bf16.msra.mxu0 %v1632_v0 }
 0x442   :  { %401 = vmatpush.bf16.msra.mxu1 %v1632_v0 }
 0x445   :  { %389 = vmatpush.bf16.msra.mxu0 %v1632_v0 }
 0x446   :  { %402 = vmatpush.bf16.msra.mxu1 %v1632_v0 }
 0x4a5   :  { %v219_v52 = vpop.f32.mrf.mxu0 }
 0x4a6   :  { %v232_v53 = vpop.f32.mrf.mxu1 }
 0x4a7   :  { %v233_v54 = vadd.f32 %v232_v53, %v219_v52 }
 0x4a9   :  { %vm236_vm8 = vcmp.ge.f32.partialorder %v233_v54, 128.0 }
 0x4aa   :  { %v237_v55 = vsel %vm236_vm8, %v198_v50, %v194_v44  ;;  %v238_v56 = vsel %vm236_vm8, %v195_v45, %v198_v50 }
 0x4ab   :  { %v239_v57 = vsub.s32 %v238_v56, %v237_v55 }
 0x4ad   :  { %v240_v58 = vshra.s32 %v239_v57, 1  ;;  %v221_v59 = vpop.f32.mrf.mxu0 }
 0x4ae   :  { %v234_v60 = vpop.f32.mrf.mxu1 }
 0x4af   :  { %v241_v61 = vadd.s32 %v240_v58, %v237_v55 }
 0x4b1   :  { %243 = vperm.xlu2 %1576, %v241_v61  }
 0x50b   :  { %v244_v62 = vpop.permute.xlu2 %243 }
 0x50c   :  { %vm245_vm9 = vcmp.ge.s32.totalorder %v1670_v3, %v244_v62  ;;  %vm246_vm10 = vcmp.ge.s32.totalorder %v1674_v4, %v244_v62 }
 0x50d   :  { %vm1414_vm11 = vmpackc.low %vm245_vm9, %vm245_vm9 }
 0x50e   :  { %vm1416_vm12 = vmpackc.low %vm246_vm10, %vm246_vm10  ;;  %1415 = vmatmul.msk.bf16.vlgmr.msra.gmra.mxu2 %vm1414_vm11, %v1633_v5 }
 0x50f   :  { %1417 = vmatmul.msk.bf16.vlgmr.msra.gmra.mxu3 %vm1416_vm12, %v1633_v5  ;;  %425 = vmatpush.bf16.msra.mxu2 %v1632_v0 }
 0x510   :  { %438 = vmatpush.bf16.msra.mxu3 %v1632_v0 }
 0x513   :  { %426 = vmatpush.bf16.msra.mxu2 %v1632_v0 }
 0x514   :  { %439 = vmatpush.bf16.msra.mxu3 %v1632_v0 }
 0x517   :  { %427 = vmatpush.bf16.msra.mxu2 %v1632_v0 }
 0x518   :  { %440 = vmatpush.bf16.msra.mxu3 %v1632_v0 }
 0x51b   :  { %428 = vmatpush.bf16.msra.mxu2 %v1632_v0 }
 0x51c   :  { %441 = vmatpush.bf16.msra.mxu3 %v1632_v0 }
 0x51f   :  { %429 = vmatpush.bf16.msra.mxu2 %v1632_v0 }
 0x520   :  { %442 = vmatpush.bf16.msra.mxu3 %v1632_v0 }
 0x523   :  { %430 = vmatpush.bf16.msra.mxu2 %v1632_v0 }
 0x524   :  { %443 = vmatpush.bf16.msra.mxu3 %v1632_v0 }
 0x527   :  { %431 = vmatpush.bf16.msra.mxu2 %v1632_v0 }
 0x528   :  { %444 = vmatpush.bf16.msra.mxu3 %v1632_v0 }
 0x52b   :  { %432 = vmatpush.bf16.msra.mxu2 %v1632_v0 }
 0x52c   :  { %445 = vmatpush.bf16.msra.mxu3 %v1632_v0 }
 0x591   :  { %v262_v63 = vpop.f32.mrf.mxu2 }
 0x592   :  { %v275_v1 = vpop.f32.mrf.mxu3 }
 0x593   :  { %v276_v2 = vadd.f32 %v275_v1, %v262_v63 }
 0x595   :  { %vm279_vm13 = vcmp.ge.f32.partialorder %v276_v2, 128.0 }
 0x596   :  { %v280_v6 = vsel %vm279_vm13, %v241_v61, %v237_v55  ;;  %v281_v7 = vsel %vm279_vm13, %v238_v56, %v241_v61 }
 0x597   :  { %v282_v8 = vsub.s32 %v281_v7, %v280_v6 }
 0x599   :  { %v283_v9 = vshra.s32 %v282_v8, 1  ;;  %v264_v10 = vpop.f32.mrf.mxu2 }
 0x59a   :  { %v277_v11 = vpop.f32.mrf.mxu3 }
 0x59b   :  { %v284_v12 = vadd.s32 %v283_v9, %v280_v6 }
 0x59d   :  { %286 = vperm.xlu2 %1576, %v284_v12  }
 0x5f7   :  { %v287_v13 = vpop.permute.xlu2 %286 }
 0x5f8   :  { %vm288_vm14 = vcmp.ge.s32.totalorder %v1670_v3, %v287_v13  ;;  %vm289_vm15 = vcmp.ge.s32.totalorder %v1674_v4, %v287_v13 }
 0x5f9   :  { %vm1420_vm0 = vmpackc.low %vm288_vm14, %vm288_vm14 }
 0x5fa   :  { %vm1422_vm1 = vmpackc.low %vm289_vm15, %vm289_vm15  ;;  %1421 = vmatmul.msk.bf16.vlgmr.msrb.gmra.mxu0 %vm1420_vm0, %v1633_v5 }
 0x5fb   :  { %1423 = vmatmul.msk.bf16.vlgmr.msrb.gmra.mxu1 %vm1422_vm1, %v1633_v5  ;;  %468 = vmatpush.bf16.msrb.mxu0 %v1632_v0 }
 0x5fc   :  { %481 = vmatpush.bf16.msrb.mxu1 %v1632_v0 }
 0x5ff   :  { %469 = vmatpush.bf16.msrb.mxu0 %v1632_v0 }
 0x600   :  { %482 = vmatpush.bf16.msrb.mxu1 %v1632_v0 }
 0x603   :  { %470 = vmatpush.bf16.msrb.mxu0 %v1632_v0 }
 0x604   :  { %483 = vmatpush.bf16.msrb.mxu1 %v1632_v0 }
 0x607   :  { %471 = vmatpush.bf16.msrb.mxu0 %v1632_v0 }
 0x608   :  { %484 = vmatpush.bf16.msrb.mxu1 %v1632_v0 }
 0x60b   :  { %472 = vmatpush.bf16.msrb.mxu0 %v1632_v0 }
 0x60c   :  { %485 = vmatpush.bf16.msrb.mxu1 %v1632_v0 }
 0x60f   :  { %473 = vmatpush.bf16.msrb.mxu0 %v1632_v0 }
 0x610   :  { %486 = vmatpush.bf16.msrb.mxu1 %v1632_v0 }
 0x613   :  { %474 = vmatpush.bf16.msrb.mxu0 %v1632_v0 }
 0x614   :  { %487 = vmatpush.bf16.msrb.mxu1 %v1632_v0 }
 0x617   :  { %475 = vmatpush.bf16.msrb.mxu0 %v1632_v0 }
 0x618   :  { %488 = vmatpush.bf16.msrb.mxu1 %v1632_v0 }
 0x677   :  { %v305_v14 = vpop.f32.mrf.mxu0 }
 0x678   :  { %v318_v15 = vpop.f32.mrf.mxu1 }
 0x679   :  { %v319_v16 = vadd.f32 %v318_v15, %v305_v14 }
 0x67b   :  { %vm322_vm2 = vcmp.ge.f32.partialorder %v319_v16, 128.0 }
 0x67c   :  { %v323_v17 = vsel %vm322_vm2, %v284_v12, %v280_v6  ;;  %v324_v18 = vsel %vm322_vm2, %v281_v7, %v284_v12 }
 0x67d   :  { %v325_v19 = vsub.s32 %v324_v18, %v323_v17 }
 0x67f   :  { %v326_v20 = vshra.s32 %v325_v19, 1  ;;  %v307_v21 = vpop.f32.mrf.mxu0 }
 0x680   :  { %v320_v22 = vpop.f32.mrf.mxu1 }
 0x681   :  { %v327_v23 = vadd.s32 %v326_v20, %v323_v17 }
 0x683   :  { %329 = vperm.xlu0 %1574, %v327_v23  }
 0x6f5   :  { %v330_v24 = vpop.permute.xlu0 %329 }
 0x6f6   :  { %vm331_vm3 = vcmp.ge.s32.totalorder %v1670_v3, %v330_v24  ;;  %vm332_vm4 = vcmp.ge.s32.totalorder %v1674_v4, %v330_v24 }
 0x6f7   :  { %vm1426_vm5 = vmpackc.low %vm331_vm3, %vm331_vm3 }
 0x6f8   :  { %vm1428_vm6 = vmpackc.low %vm332_vm4, %vm332_vm4  ;;  %1427 = vmatmul.msk.bf16.vlgmr.msrb.gmra.mxu2 %vm1426_vm5, %v1633_v5 }
 0x6f9   :  { %1429 = vmatmul.msk.bf16.vlgmr.msrb.gmra.mxu3 %vm1428_vm6, %v1633_v5  ;;  %511 = vmatpush.bf16.msrb.mxu2 %v1632_v0 }
 0x6fa   :  { %524 = vmatpush.bf16.msrb.mxu3 %v1632_v0 }
 0x6fd   :  { %512 = vmatpush.bf16.msrb.mxu2 %v1632_v0 }
 0x6fe   :  { %525 = vmatpush.bf16.msrb.mxu3 %v1632_v0 }
 0x701   :  { %513 = vmatpush.bf16.msrb.mxu2 %v1632_v0 }
 0x702   :  { %526 = vmatpush.bf16.msrb.mxu3 %v1632_v0 }
 0x705   :  { %514 = vmatpush.bf16.msrb.mxu2 %v1632_v0 }
 0x706   :  { %527 = vmatpush.bf16.msrb.mxu3 %v1632_v0 }
 0x709   :  { %515 = vmatpush.bf16.msrb.mxu2 %v1632_v0 }
 0x70a   :  { %528 = vmatpush.bf16.msrb.mxu3 %v1632_v0 }
 0x70d   :  { %516 = vmatpush.bf16.msrb.mxu2 %v1632_v0 }
 0x70e   :  { %529 = vmatpush.bf16.msrb.mxu3 %v1632_v0 }
 0x711   :  { %517 = vmatpush.bf16.msrb.mxu2 %v1632_v0 }
 0x712   :  { %530 = vmatpush.bf16.msrb.mxu3 %v1632_v0 }
 0x715   :  { %518 = vmatpush.bf16.msrb.mxu2 %v1632_v0 }
 0x716   :  { %531 = vmatpush.bf16.msrb.mxu3 %v1632_v0 }
 0x77b   :  { %v348_v25 = vpop.f32.mrf.mxu2 }
 0x77c   :  { %v361_v26 = vpop.f32.mrf.mxu3 }
 0x77d   :  { %v362_v27 = vadd.f32 %v361_v26, %v348_v25 }
 0x77f   :  { %vm365_vm7 = vcmp.ge.f32.partialorder %v362_v27, 128.0 }
 0x780   :  { %v366_v28 = vsel %vm365_vm7, %v327_v23, %v323_v17  ;;  %v367_v29 = vsel %vm365_vm7, %v324_v18, %v327_v23 }
 0x781   :  { %v368_v30 = vsub.s32 %v367_v29, %v366_v28 }
 0x783   :  { %v369_v31 = vshra.s32 %v368_v30, 1  ;;  %v350_v32 = vpop.f32.mrf.mxu2 }
 0x784   :  { %v363_v33 = vpop.f32.mrf.mxu3 }
 0x785   :  { %v370_v34 = vadd.s32 %v369_v31, %v366_v28 }
 0x787   :  { %372 = vperm.xlu1 %1575, %v370_v34  }
 0x7f9   :  { %v373_v35 = vpop.permute.xlu1 %372 }
 0x7fa   :  { %vm374_vm8 = vcmp.ge.s32.totalorder %v1670_v3, %v373_v35  ;;  %vm375_vm9 = vcmp.ge.s32.totalorder %v1674_v4, %v373_v35 }
 0x7fb   :  { %vm1432_vm10 = vmpackc.low %vm374_vm8, %vm374_vm8 }
 0x7fc   :  { %vm1434_vm11 = vmpackc.low %vm375_vm9, %vm375_vm9  ;;  %1433 = vmatmul.msk.bf16.vlgmr.msra.gmra.mxu0 %vm1432_vm10, %v1633_v5 }
 0x7fd   :  { %1435 = vmatmul.msk.bf16.vlgmr.msra.gmra.mxu1 %vm1434_vm11, %v1633_v5  ;;  %554 = vmatpush.bf16.msra.mxu0 %v1632_v0 }
 0x7fe   :  { %567 = vmatpush.bf16.msra.mxu1 %v1632_v0 }
 0x801   :  { %555 = vmatpush.bf16.msra.mxu0 %v1632_v0 }
 0x802   :  { %568 = vmatpush.bf16.msra.mxu1 %v1632_v0 }
 0x805   :  { %556 = vmatpush.bf16.msra.mxu0 %v1632_v0 }
 0x806   :  { %569 = vmatpush.bf16.msra.mxu1 %v1632_v0 }
 0x809   :  { %557 = vmatpush.bf16.msra.mxu0 %v1632_v0 }
 0x80a   :  { %570 = vmatpush.bf16.msra.mxu1 %v1632_v0 }
 0x80d   :  { %558 = vmatpush.bf16.msra.mxu0 %v1632_v0 }
 0x80e   :  { %571 = vmatpush.bf16.msra.mxu1 %v1632_v0 }
 0x811   :  { %559 = vmatpush.bf16.msra.mxu0 %v1632_v0 }
 0x812   :  { %572 = vmatpush.bf16.msra.mxu1 %v1632_v0 }
 0x815   :  { %560 = vmatpush.bf16.msra.mxu0 %v1632_v0 }
 0x816   :  { %573 = vmatpush.bf16.msra.mxu1 %v1632_v0 }
 0x819   :  { %561 = vmatpush.bf16.msra.mxu0 %v1632_v0 }
 0x81a   :  { %574 = vmatpush.bf16.msra.mxu1 %v1632_v0 }
 0x879   :  { %v391_v36 = vpop.f32.mrf.mxu0 }
 0x87a   :  { %v404_v37 = vpop.f32.mrf.mxu1 }
 0x87b   :  { %v405_v38 = vadd.f32 %v404_v37, %v391_v36 }
 0x87d   :  { %vm408_vm12 = vcmp.ge.f32.partialorder %v405_v38, 128.0 }
 0x87e   :  { %v409_v39 = vsel %vm408_vm12, %v370_v34, %v366_v28  ;;  %v410_v40 = vsel %vm408_vm12, %v367_v29, %v370_v34 }
 0x87f   :  { %v411_v41 = vsub.s32 %v410_v40, %v409_v39 }
 0x881   :  { %v412_v42 = vshra.s32 %v411_v41, 1  ;;  %v393_v43 = vpop.f32.mrf.mxu0 }
 0x882   :  { %v406_v44 = vpop.f32.mrf.mxu1 }
 0x883   :  { %v413_v45 = vadd.s32 %v412_v42, %v409_v39 }
 0x885   :  { %415 = vperm.xlu2 %1576, %v413_v45  }
 0x8df   :  { %v416_v46 = vpop.permute.xlu2 %415 }
 0x8e0   :  { %vm417_vm13 = vcmp.ge.s32.totalorder %v1670_v3, %v416_v46  ;;  %vm418_vm14 = vcmp.ge.s32.totalorder %v1674_v4, %v416_v46 }
 0x8e1   :  { %vm1438_vm15 = vmpackc.low %vm417_vm13, %vm417_vm13 }
 0x8e2   :  { %vm1440_vm0 = vmpackc.low %vm418_vm14, %vm418_vm14  ;;  %1439 = vmatmul.msk.bf16.vlgmr.msra.gmra.mxu2 %vm1438_vm15, %v1633_v5 }
 0x8e3   :  { %1441 = vmatmul.msk.bf16.vlgmr.msra.gmra.mxu3 %vm1440_vm0, %v1633_v5  ;;  %597 = vmatpush.bf16.msra.mxu2 %v1632_v0 }
 0x8e4   :  { %610 = vmatpush.bf16.msra.mxu3 %v1632_v0 }
 0x8e7   :  { %598 = vmatpush.bf16.msra.mxu2 %v1632_v0 }
 0x8e8   :  { %611 = vmatpush.bf16.msra.mxu3 %v1632_v0 }
 0x8eb   :  { %599 = vmatpush.bf16.msra.mxu2 %v1632_v0 }
 0x8ec   :  { %612 = vmatpush.bf16.msra.mxu3 %v1632_v0 }
 0x8ef   :  { %600 = vmatpush.bf16.msra.mxu2 %v1632_v0 }
 0x8f0   :  { %613 = vmatpush.bf16.msra.mxu3 %v1632_v0 }
 0x8f3   :  { %601 = vmatpush.bf16.msra.mxu2 %v1632_v0 }
 0x8f4   :  { %614 = vmatpush.bf16.msra.mxu3 %v1632_v0 }
 0x8f7   :  { %602 = vmatpush.bf16.msra.mxu2 %v1632_v0 }
 0x8f8   :  { %615 = vmatpush.bf16.msra.mxu3 %v1632_v0 }
 0x8fb   :  { %603 = vmatpush.bf16.msra.mxu2 %v1632_v0 }
 0x8fc   :  { %616 = vmatpush.bf16.msra.mxu3 %v1632_v0 }
 0x8ff   :  { %604 = vmatpush.bf16.msra.mxu2 %v1632_v0 }
 0x900   :  { %617 = vmatpush.bf16.msra.mxu3 %v1632_v0 }
 0x965   :  { %v434_v47 = vpop.f32.mrf.mxu2 }
 0x966   :  { %v447_v48 = vpop.f32.mrf.mxu3 }
 0x967   :  { %v448_v49 = vadd.f32 %v447_v48, %v434_v47 }
 0x969   :  { %vm451_vm1 = vcmp.ge.f32.partialorder %v448_v49, 128.0 }
 0x96a   :  { %v452_v50 = vsel %vm451_vm1, %v413_v45, %v409_v39  ;;  %v453_v51 = vsel %vm451_vm1, %v410_v40, %v413_v45 }
 0x96b   :  { %v454_v52 = vsub.s32 %v453_v51, %v452_v50 }
 0x96d   :  { %v455_v53 = vshra.s32 %v454_v52, 1  ;;  %v436_v54 = vpop.f32.mrf.mxu2 }
 0x96e   :  { %v449_v55 = vpop.f32.mrf.mxu3 }
 0x96f   :  { %v456_v56 = vadd.s32 %v455_v53, %v452_v50 }
 0x971   :  { %458 = vperm.xlu0 %1574, %v456_v56  }
 0x9e3   :  { %v459_v57 = vpop.permute.xlu0 %458 }
 0x9e4   :  { %vm460_vm2 = vcmp.ge.s32.totalorder %v1670_v3, %v459_v57  ;;  %vm461_vm3 = vcmp.ge.s32.totalorder %v1674_v4, %v459_v57 }
 0x9e5   :  { %vm1444_vm4 = vmpackc.low %vm460_vm2, %vm460_vm2 }
 0x9e6   :  { %vm1446_vm5 = vmpackc.low %vm461_vm3, %vm461_vm3  ;;  %1445 = vmatmul.msk.bf16.vlgmr.msrb.gmra.mxu0 %vm1444_vm4, %v1633_v5 }
 0x9e7   :  { %1447 = vmatmul.msk.bf16.vlgmr.msrb.gmra.mxu1 %vm1446_vm5, %v1633_v5  ;;  %640 = vmatpush.bf16.msrb.mxu0 %v1632_v0 }
 0x9e8   :  { %653 = vmatpush.bf16.msrb.mxu1 %v1632_v0 }
 0x9eb   :  { %641 = vmatpush.bf16.msrb.mxu0 %v1632_v0 }
 0x9ec   :  { %654 = vmatpush.bf16.msrb.mxu1 %v1632_v0 }
 0x9ef   :  { %642 = vmatpush.bf16.msrb.mxu0 %v1632_v0 }
 0x9f0   :  { %655 = vmatpush.bf16.msrb.mxu1 %v1632_v0 }
 0x9f3   :  { %643 = vmatpush.bf16.msrb.mxu0 %v1632_v0 }
 0x9f4   :  { %656 = vmatpush.bf16.msrb.mxu1 %v1632_v0 }
 0x9f7   :  { %644 = vmatpush.bf16.msrb.mxu0 %v1632_v0 }
 0x9f8   :  { %657 = vmatpush.bf16.msrb.mxu1 %v1632_v0 }
 0x9fb   :  { %645 = vmatpush.bf16.msrb.mxu0 %v1632_v0 }
 0x9fc   :  { %658 = vmatpush.bf16.msrb.mxu1 %v1632_v0 }
 0x9ff   :  { %646 = vmatpush.bf16.msrb.mxu0 %v1632_v0 }
 0xa00   :  { %659 = vmatpush.bf16.msrb.mxu1 %v1632_v0 }
 0xa03   :  { %647 = vmatpush.bf16.msrb.mxu0 %v1632_v0 }
 0xa04   :  { %660 = vmatpush.bf16.msrb.mxu1 %v1632_v0 }
 0xa63   :  { %v477_v58 = vpop.f32.mrf.mxu0 }
 0xa64   :  { %v490_v59 = vpop.f32.mrf.mxu1 }
 0xa65   :  { %v491_v60 = vadd.f32 %v490_v59, %v477_v58 }
 0xa67   :  { %vm494_vm6 = vcmp.ge.f32.partialorder %v491_v60, 128.0 }
 0xa68   :  { %v495_v61 = vsel %vm494_vm6, %v456_v56, %v452_v50  ;;  %v496_v62 = vsel %vm494_vm6, %v453_v51, %v456_v56 }
 0xa69   :  { %v497_v63 = vsub.s32 %v496_v62, %v495_v61 }
 0xa6b   :  { %v498_v1 = vshra.s32 %v497_v63, 1  ;;  %v479_v2 = vpop.f32.mrf.mxu0 }
 0xa6c   :  { %v492_v6 = vpop.f32.mrf.mxu1 }
 0xa6d   :  { %v499_v7 = vadd.s32 %v498_v1, %v495_v61 }
 0xa6f   :  { %501 = vperm.xlu1 %1575, %v499_v7  }
 0xae1   :  { %v502_v8 = vpop.permute.xlu1 %501 }
 0xae2   :  { %vm503_vm7 = vcmp.ge.s32.totalorder %v1670_v3, %v502_v8  ;;  %vm504_vm8 = vcmp.ge.s32.totalorder %v1674_v4, %v502_v8 }
 0xae3   :  { %vm1450_vm9 = vmpackc.low %vm503_vm7, %vm503_vm7 }
 0xae4   :  { %vm1452_vm10 = vmpackc.low %vm504_vm8, %vm504_vm8  ;;  %1451 = vmatmul.msk.bf16.vlgmr.msrb.gmra.mxu2 %vm1450_vm9, %v1633_v5 }
 0xae5   :  { %1453 = vmatmul.msk.bf16.vlgmr.msrb.gmra.mxu3 %vm1452_vm10, %v1633_v5  ;;  %683 = vmatpush.bf16.msrb.mxu2 %v1632_v0 }
 0xae6   :  { %696 = vmatpush.bf16.msrb.mxu3 %v1632_v0 }
 0xae9   :  { %684 = vmatpush.bf16.msrb.mxu2 %v1632_v0 }
 0xaea   :  { %697 = vmatpush.bf16.msrb.mxu3 %v1632_v0 }
 0xaed   :  { %685 = vmatpush.bf16.msrb.mxu2 %v1632_v0 }
 0xaee   :  { %698 = vmatpush.bf16.msrb.mxu3 %v1632_v0 }
 0xaf1   :  { %686 = vmatpush.bf16.msrb.mxu2 %v1632_v0 }
 0xaf2   :  { %699 = vmatpush.bf16.msrb.mxu3 %v1632_v0 }
 0xaf5   :  { %687 = vmatpush.bf16.msrb.mxu2 %v1632_v0 }
 0xaf6   :  { %700 = vmatpush.bf16.msrb.mxu3 %v1632_v0 }
 0xaf9   :  { %688 = vmatpush.bf16.msrb.mxu2 %v1632_v0 }
 0xafa   :  { %701 = vmatpush.bf16.msrb.mxu3 %v1632_v0 }
 0xafd   :  { %689 = vmatpush.bf16.msrb.mxu2 %v1632_v0 }
 0xafe   :  { %702 = vmatpush.bf16.msrb.mxu3 %v1632_v0 }
 0xb01   :  { %690 = vmatpush.bf16.msrb.mxu2 %v1632_v0 }
 0xb02   :  { %703 = vmatpush.bf16.msrb.mxu3 %v1632_v0 }
 0xb67   :  { %v520_v9 = vpop.f32.mrf.mxu2 }
 0xb68   :  { %v533_v10 = vpop.f32.mrf.mxu3 }
 0xb69   :  { %v534_v11 = vadd.f32 %v533_v10, %v520_v9 }
 0xb6b   :  { %vm537_vm11 = vcmp.ge.f32.partialorder %v534_v11, 128.0 }
 0xb6c   :  { %v538_v12 = vsel %vm537_vm11, %v499_v7, %v495_v61  ;;  %v539_v13 = vsel %vm537_vm11, %v496_v62, %v499_v7 }
 0xb6d   :  { %v540_v14 = vsub.s32 %v539_v13, %v538_v12 }
 0xb6f   :  { %v541_v15 = vshra.s32 %v540_v14, 1  ;;  %v522_v16 = vpop.f32.mrf.mxu2 }
 0xb70   :  { %v535_v17 = vpop.f32.mrf.mxu3 }
 0xb71   :  { %v542_v18 = vadd.s32 %v541_v15, %v538_v12 }
 0xb73   :  { %544 = vperm.xlu2 %1576, %v542_v18  }
 0xbcd   :  { %v545_v19 = vpop.permute.xlu2 %544 }
 0xbce   :  { %vm546_vm12 = vcmp.ge.s32.totalorder %v1670_v3, %v545_v19  ;;  %vm547_vm13 = vcmp.ge.s32.totalorder %v1674_v4, %v545_v19 }
 0xbcf   :  { %vm1456_vm14 = vmpackc.low %vm546_vm12, %vm546_vm12 }
 0xbd0   :  { %vm1458_vm15 = vmpackc.low %vm547_vm13, %vm547_vm13  ;;  %1457 = vmatmul.msk.bf16.vlgmr.msra.gmra.mxu0 %vm1456_vm14, %v1633_v5 }
 0xbd1   :  { %1459 = vmatmul.msk.bf16.vlgmr.msra.gmra.mxu1 %vm1458_vm15, %v1633_v5  ;;  %726 = vmatpush.bf16.msra.mxu0 %v1632_v0 }
 0xbd2   :  { %739 = vmatpush.bf16.msra.mxu1 %v1632_v0 }
 0xbd5   :  { %727 = vmatpush.bf16.msra.mxu0 %v1632_v0 }
 0xbd6   :  { %740 = vmatpush.bf16.msra.mxu1 %v1632_v0 }
 0xbd9   :  { %728 = vmatpush.bf16.msra.mxu0 %v1632_v0 }
 0xbda   :  { %741 = vmatpush.bf16.msra.mxu1 %v1632_v0 }
 0xbdd   :  { %729 = vmatpush.bf16.msra.mxu0 %v1632_v0 }
 0xbde   :  { %742 = vmatpush.bf16.msra.mxu1 %v1632_v0 }
 0xbe1   :  { %730 = vmatpush.bf16.msra.mxu0 %v1632_v0 }
 0xbe2   :  { %743 = vmatpush.bf16.msra.mxu1 %v1632_v0 }
 0xbe5   :  { %731 = vmatpush.bf16.msra.mxu0 %v1632_v0 }
 0xbe6   :  { %744 = vmatpush.bf16.msra.mxu1 %v1632_v0 }
 0xbe9   :  { %732 = vmatpush.bf16.msra.mxu0 %v1632_v0 }
 0xbea   :  { %745 = vmatpush.bf16.msra.mxu1 %v1632_v0 }
 0xbed   :  { %733 = vmatpush.bf16.msra.mxu0 %v1632_v0 }
 0xbee   :  { %746 = vmatpush.bf16.msra.mxu1 %v1632_v0 }
 0xc4d   :  { %v563_v20 = vpop.f32.mrf.mxu0 }
 0xc4e   :  { %v576_v21 = vpop.f32.mrf.mxu1 }
 0xc4f   :  { %v577_v22 = vadd.f32 %v576_v21, %v563_v20 }
 0xc51   :  { %vm580_vm0 = vcmp.ge.f32.partialorder %v577_v22, 128.0 }
 0xc52   :  { %v581_v23 = vsel %vm580_vm0, %v542_v18, %v538_v12  ;;  %v582_v24 = vsel %vm580_vm0, %v539_v13, %v542_v18 }
 0xc53   :  { %v583_v25 = vsub.s32 %v582_v24, %v581_v23 }
 0xc55   :  { %v584_v26 = vshra.s32 %v583_v25, 1  ;;  %v565_v27 = vpop.f32.mrf.mxu0 }
 0xc56   :  { %v578_v28 = vpop.f32.mrf.mxu1 }
 0xc57   :  { %v585_v29 = vadd.s32 %v584_v26, %v581_v23 }
 0xc59   :  { %587 = vperm.xlu0 %1574, %v585_v29  }
 0xccb   :  { %v588_v30 = vpop.permute.xlu0 %587 }
 0xccc   :  { %vm589_vm1 = vcmp.ge.s32.totalorder %v1670_v3, %v588_v30  ;;  %vm590_vm2 = vcmp.ge.s32.totalorder %v1674_v4, %v588_v30 }
 0xccd   :  { %vm1462_vm3 = vmpackc.low %vm589_vm1, %vm589_vm1 }
 0xcce   :  { %vm1464_vm4 = vmpackc.low %vm590_vm2, %vm590_vm2  ;;  %1463 = vmatmul.msk.bf16.vlgmr.msra.gmra.mxu2 %vm1462_vm3, %v1633_v5 }
 0xccf   :  { %1465 = vmatmul.msk.bf16.vlgmr.msra.gmra.mxu3 %vm1464_vm4, %v1633_v5  ;;  %769 = vmatpush.bf16.msra.mxu2 %v1632_v0 }
 0xcd0   :  { %782 = vmatpush.bf16.msra.mxu3 %v1632_v0 }
 0xcd3   :  { %770 = vmatpush.bf16.msra.mxu2 %v1632_v0 }
 0xcd4   :  { %783 = vmatpush.bf16.msra.mxu3 %v1632_v0 }
 0xcd7   :  { %771 = vmatpush.bf16.msra.mxu2 %v1632_v0 }
 0xcd8   :  { %784 = vmatpush.bf16.msra.mxu3 %v1632_v0 }
 0xcdb   :  { %772 = vmatpush.bf16.msra.mxu2 %v1632_v0 }
 0xcdc   :  { %785 = vmatpush.bf16.msra.mxu3 %v1632_v0 }
 0xcdf   :  { %773 = vmatpush.bf16.msra.mxu2 %v1632_v0 }
 0xce0   :  { %786 = vmatpush.bf16.msra.mxu3 %v1632_v0 }
 0xce3   :  { %774 = vmatpush.bf16.msra.mxu2 %v1632_v0 }
 0xce4   :  { %787 = vmatpush.bf16.msra.mxu3 %v1632_v0 }
 0xce7   :  { %775 = vmatpush.bf16.msra.mxu2 %v1632_v0 }
 0xce8   :  { %788 = vmatpush.bf16.msra.mxu3 %v1632_v0 }
 0xceb   :  { %776 = vmatpush.bf16.msra.mxu2 %v1632_v0 }
 0xcec   :  { %789 = vmatpush.bf16.msra.mxu3 %v1632_v0 }
 0xd51   :  { %v606_v31 = vpop.f32.mrf.mxu2 }
 0xd52   :  { %v619_v32 = vpop.f32.mrf.mxu3 }
 0xd53   :  { %v620_v33 = vadd.f32 %v619_v32, %v606_v31 }
 0xd55   :  { %vm623_vm5 = vcmp.ge.f32.partialorder %v620_v33, 128.0 }
 0xd56   :  { %v624_v34 = vsel %vm623_vm5, %v585_v29, %v581_v23  ;;  %v625_v35 = vsel %vm623_vm5, %v582_v24, %v585_v29 }
 0xd57   :  { %v626_v36 = vsub.s32 %v625_v35, %v624_v34 }
 0xd59   :  { %v627_v37 = vshra.s32 %v626_v36, 1  ;;  %v608_v38 = vpop.f32.mrf.mxu2 }
 0xd5a   :  { %v621_v39 = vpop.f32.mrf.mxu3 }
 0xd5b   :  { %v628_v40 = vadd.s32 %v627_v37, %v624_v34 }
 0xd5d   :  { %630 = vperm.xlu1 %1575, %v628_v40  }
 0xdcf   :  { %v631_v41 = vpop.permute.xlu1 %630 }
 0xdd0   :  { %vm632_vm6 = vcmp.ge.s32.totalorder %v1670_v3, %v631_v41  ;;  %vm633_vm7 = vcmp.ge.s32.totalorder %v1674_v4, %v631_v41 }
 0xdd1   :  { %vm1468_vm8 = vmpackc.low %vm632_vm6, %vm632_vm6 }
 0xdd2   :  { %vm1470_vm9 = vmpackc.low %vm633_vm7, %vm633_vm7  ;;  %1469 = vmatmul.msk.bf16.vlgmr.msrb.gmra.mxu0 %vm1468_vm8, %v1633_v5 }
 0xdd3   :  { %1471 = vmatmul.msk.bf16.vlgmr.msrb.gmra.mxu1 %vm1470_vm9, %v1633_v5  ;;  %812 = vmatpush.bf16.msrb.mxu0 %v1632_v0 }
 0xdd4   :  { %825 = vmatpush.bf16.msrb.mxu1 %v1632_v0 }
 0xdd7   :  { %813 = vmatpush.bf16.msrb.mxu0 %v1632_v0 }
 0xdd8   :  { %826 = vmatpush.bf16.msrb.mxu1 %v1632_v0 }
 0xddb   :  { %814 = vmatpush.bf16.msrb.mxu0 %v1632_v0 }
 0xddc   :  { %827 = vmatpush.bf16.msrb.mxu1 %v1632_v0 }
 0xddf   :  { %815 = vmatpush.bf16.msrb.mxu0 %v1632_v0 }
 0xde0   :  { %828 = vmatpush.bf16.msrb.mxu1 %v1632_v0 }
 0xde3   :  { %816 = vmatpush.bf16.msrb.mxu0 %v1632_v0 }
 0xde4   :  { %829 = vmatpush.bf16.msrb.mxu1 %v1632_v0 }
 0xde7   :  { %817 = vmatpush.bf16.msrb.mxu0 %v1632_v0 }
 0xde8   :  { %830 = vmatpush.bf16.msrb.mxu1 %v1632_v0 }
 0xdeb   :  { %818 = vmatpush.bf16.msrb.mxu0 %v1632_v0 }
 0xdec   :  { %831 = vmatpush.bf16.msrb.mxu1 %v1632_v0 }
 0xdef   :  { %819 = vmatpush.bf16.msrb.mxu0 %v1632_v0 }
 0xdf0   :  { %832 = vmatpush.bf16.msrb.mxu1 %v1632_v0 }
 0xe4f   :  { %v649_v42 = vpop.f32.mrf.mxu0 }
 0xe50   :  { %v662_v43 = vpop.f32.mrf.mxu1 }
 0xe51   :  { %v663_v44 = vadd.f32 %v662_v43, %v649_v42 }
 0xe53   :  { %vm666_vm10 = vcmp.ge.f32.partialorder %v663_v44, 128.0 }
 0xe54   :  { %v667_v45 = vsel %vm666_vm10, %v628_v40, %v624_v34  ;;  %v668_v46 = vsel %vm666_vm10, %v625_v35, %v628_v40 }
 0xe55   :  { %v669_v47 = vsub.s32 %v668_v46, %v667_v45 }
 0xe57   :  { %v670_v48 = vshra.s32 %v669_v47, 1  ;;  %v651_v49 = vpop.f32.mrf.mxu0 }
 0xe58   :  { %v664_v50 = vpop.f32.mrf.mxu1 }
 0xe59   :  { %v671_v51 = vadd.s32 %v670_v48, %v667_v45 }
 0xe5b   :  { %673 = vperm.xlu2 %1576, %v671_v51  }
 0xeb5   :  { %v674_v52 = vpop.permute.xlu2 %673 }
 0xeb6   :  { %vm675_vm11 = vcmp.ge.s32.totalorder %v1670_v3, %v674_v52  ;;  %vm676_vm12 = vcmp.ge.s32.totalorder %v1674_v4, %v674_v52 }
 0xeb7   :  { %vm1474_vm13 = vmpackc.low %vm675_vm11, %vm675_vm11 }
 0xeb8   :  { %vm1476_vm14 = vmpackc.low %vm676_vm12, %vm676_vm12  ;;  %1475 = vmatmul.msk.bf16.vlgmr.msrb.gmra.mxu2 %vm1474_vm13, %v1633_v5 }
 0xeb9   :  { %1477 = vmatmul.msk.bf16.vlgmr.msrb.gmra.mxu3 %vm1476_vm14, %v1633_v5  ;;  %855 = vmatpush.bf16.msrb.mxu2 %v1632_v0 }
 0xeba   :  { %868 = vmatpush.bf16.msrb.mxu3 %v1632_v0 }
 0xebd   :  { %856 = vmatpush.bf16.msrb.mxu2 %v1632_v0 }
 0xebe   :  { %869 = vmatpush.bf16.msrb.mxu3 %v1632_v0 }
 0xec1   :  { %857 = vmatpush.bf16.msrb.mxu2 %v1632_v0 }
 0xec2   :  { %870 = vmatpush.bf16.msrb.mxu3 %v1632_v0 }
 0xec5   :  { %858 = vmatpush.bf16.msrb.mxu2 %v1632_v0 }
 0xec6   :  { %871 = vmatpush.bf16.msrb.mxu3 %v1632_v0 }
 0xec9   :  { %859 = vmatpush.bf16.msrb.mxu2 %v1632_v0 }
 0xeca   :  { %872 = vmatpush.bf16.msrb.mxu3 %v1632_v0 }
 0xecd   :  { %860 = vmatpush.bf16.msrb.mxu2 %v1632_v0 }
 0xece   :  { %873 = vmatpush.bf16.msrb.mxu3 %v1632_v0 }
 0xed1   :  { %861 = vmatpush.bf16.msrb.mxu2 %v1632_v0 }
 0xed2   :  { %874 = vmatpush.bf16.msrb.mxu3 %v1632_v0 }
 0xed5   :  { %862 = vmatpush.bf16.msrb.mxu2 %v1632_v0 }
 0xed6   :  { %875 = vmatpush.bf16.msrb.mxu3 %v1632_v0 }
 0xf3b   :  { %v692_v53 = vpop.f32.mrf.mxu2 }
 0xf3c   :  { %v705_v54 = vpop.f32.mrf.mxu3 }
 0xf3d   :  { %v706_v55 = vadd.f32 %v705_v54, %v692_v53 }
 0xf3f   :  { %vm709_vm15 = vcmp.ge.f32.partialorder %v706_v55, 128.0 }
 0xf40   :  { %v710_v56 = vsel %vm709_vm15, %v671_v51, %v667_v45  ;;  %v711_v57 = vsel %vm709_vm15, %v668_v46, %v671_v51 }
 0xf41   :  { %v712_v58 = vsub.s32 %v711_v57, %v710_v56 }
 0xf43   :  { %v713_v59 = vshra.s32 %v712_v58, 1  ;;  %v694_v60 = vpop.f32.mrf.mxu2 }
 0xf44   :  { %v707_v61 = vpop.f32.mrf.mxu3 }
 0xf45   :  { %v714_v62 = vadd.s32 %v713_v59, %v710_v56 }
 0xf47   :  { %716 = vperm.xlu0 %1574, %v714_v62  }
 0xfb9   :  { %v717_v63 = vpop.permute.xlu0 %716 }
 0xfba   :  { %vm718_vm0 = vcmp.ge.s32.totalorder %v1670_v3, %v717_v63  ;;  %vm719_vm1 = vcmp.ge.s32.totalorder %v1674_v4, %v717_v63 }
 0xfbb   :  { %vm1480_vm2 = vmpackc.low %vm718_vm0, %vm718_vm0 }
 0xfbc   :  { %vm1482_vm3 = vmpackc.low %vm719_vm1, %vm719_vm1  ;;  %1481 = vmatmul.msk.bf16.vlgmr.msra.gmra.mxu0 %vm1480_vm2, %v1633_v5 }
 0xfbd   :  { %1483 = vmatmul.msk.bf16.vlgmr.msra.gmra.mxu1 %vm1482_vm3, %v1633_v5  ;;  %898 = vmatpush.bf16.msra.mxu0 %v1632_v0 }
 0xfbe   :  { %911 = vmatpush.bf16.msra.mxu1 %v1632_v0 }
 0xfc1   :  { %899 = vmatpush.bf16.msra.mxu0 %v1632_v0 }
 0xfc2   :  { %912 = vmatpush.bf16.msra.mxu1 %v1632_v0 }
 0xfc5   :  { %900 = vmatpush.bf16.msra.mxu0 %v1632_v0 }
 0xfc6   :  { %913 = vmatpush.bf16.msra.mxu1 %v1632_v0 }
 0xfc9   :  { %901 = vmatpush.bf16.msra.mxu0 %v1632_v0 }
 0xfca   :  { %914 = vmatpush.bf16.msra.mxu1 %v1632_v0 }
 0xfcd   :  { %902 = vmatpush.bf16.msra.mxu0 %v1632_v0 }
 0xfce   :  { %915 = vmatpush.bf16.msra.mxu1 %v1632_v0 }
 0xfd1   :  { %903 = vmatpush.bf16.msra.mxu0 %v1632_v0 }
 0xfd2   :  { %916 = vmatpush.bf16.msra.mxu1 %v1632_v0 }
 0xfd5   :  { %904 = vmatpush.bf16.msra.mxu0 %v1632_v0 }
 0xfd6   :  { %917 = vmatpush.bf16.msra.mxu1 %v1632_v0 }
 0xfd9   :  { %905 = vmatpush.bf16.msra.mxu0 %v1632_v0 }
 0xfda   :  { %918 = vmatpush.bf16.msra.mxu1 %v1632_v0 }
0x1039   :  { %v735_v1 = vpop.f32.mrf.mxu0 }
0x103a   :  { %v748_v2 = vpop.f32.mrf.mxu1 }
0x103b   :  { %v749_v6 = vadd.f32 %v748_v2, %v735_v1 }
0x103d   :  { %vm752_vm4 = vcmp.ge.f32.partialorder %v749_v6, 128.0 }
0x103e   :  { %v753_v7 = vsel %vm752_vm4, %v714_v62, %v710_v56  ;;  %v754_v8 = vsel %vm752_vm4, %v711_v57, %v714_v62 }
0x103f   :  { %v755_v9 = vsub.s32 %v754_v8, %v753_v7 }
0x1041   :  { %v756_v10 = vshra.s32 %v755_v9, 1  ;;  %v737_v11 = vpop.f32.mrf.mxu0 }
0x1042   :  { %v750_v12 = vpop.f32.mrf.mxu1 }
0x1043   :  { %v757_v13 = vadd.s32 %v756_v10, %v753_v7 }
0x1045   :  { %759 = vperm.xlu1 %1575, %v757_v13  }
0x10b7   :  { %v760_v14 = vpop.permute.xlu1 %759 }
0x10b8   :  { %vm761_vm5 = vcmp.ge.s32.totalorder %v1670_v3, %v760_v14  ;;  %vm762_vm6 = vcmp.ge.s32.totalorder %v1674_v4, %v760_v14 }
0x10b9   :  { %vm1486_vm7 = vmpackc.low %vm761_vm5, %vm761_vm5 }
0x10ba   :  { %vm1488_vm8 = vmpackc.low %vm762_vm6, %vm762_vm6  ;;  %1487 = vmatmul.msk.bf16.vlgmr.msra.gmra.mxu2 %vm1486_vm7, %v1633_v5 }
0x10bb   :  { %1489 = vmatmul.msk.bf16.vlgmr.msra.gmra.mxu3 %vm1488_vm8, %v1633_v5  ;;  %941 = vmatpush.bf16.msra.mxu2 %v1632_v0 }
0x10bc   :  { %954 = vmatpush.bf16.msra.mxu3 %v1632_v0 }
0x10bf   :  { %942 = vmatpush.bf16.msra.mxu2 %v1632_v0 }
0x10c0   :  { %955 = vmatpush.bf16.msra.mxu3 %v1632_v0 }
0x10c3   :  { %943 = vmatpush.bf16.msra.mxu2 %v1632_v0 }
0x10c4   :  { %956 = vmatpush.bf16.msra.mxu3 %v1632_v0 }
0x10c7   :  { %944 = vmatpush.bf16.msra.mxu2 %v1632_v0 }
0x10c8   :  { %957 = vmatpush.bf16.msra.mxu3 %v1632_v0 }
0x10cb   :  { %945 = vmatpush.bf16.msra.mxu2 %v1632_v0 }
0x10cc   :  { %958 = vmatpush.bf16.msra.mxu3 %v1632_v0 }
0x10cf   :  { %946 = vmatpush.bf16.msra.mxu2 %v1632_v0 }
0x10d0   :  { %959 = vmatpush.bf16.msra.mxu3 %v1632_v0 }
0x10d3   :  { %947 = vmatpush.bf16.msra.mxu2 %v1632_v0 }
0x10d4   :  { %960 = vmatpush.bf16.msra.mxu3 %v1632_v0 }
0x10d7   :  { %948 = vmatpush.bf16.msra.mxu2 %v1632_v0 }
0x10d8   :  { %961 = vmatpush.bf16.msra.mxu3 %v1632_v0 }
0x113d   :  { %v778_v15 = vpop.f32.mrf.mxu2 }
0x113e   :  { %v791_v16 = vpop.f32.mrf.mxu3 }
0x113f   :  { %v792_v17 = vadd.f32 %v791_v16, %v778_v15 }
0x1141   :  { %vm795_vm9 = vcmp.ge.f32.partialorder %v792_v17, 128.0 }
0x1142   :  { %v796_v18 = vsel %vm795_vm9, %v757_v13, %v753_v7  ;;  %v797_v19 = vsel %vm795_vm9, %v754_v8, %v757_v13 }
0x1143   :  { %v798_v20 = vsub.s32 %v797_v19, %v796_v18 }
0x1145   :  { %v799_v21 = vshra.s32 %v798_v20, 1  ;;  %v780_v22 = vpop.f32.mrf.mxu2 }
0x1146   :  { %v793_v23 = vpop.f32.mrf.mxu3 }
0x1147   :  { %v800_v24 = vadd.s32 %v799_v21, %v796_v18 }
0x1149   :  { %802 = vperm.xlu2 %1576, %v800_v24  }
0x11a3   :  { %v803_v25 = vpop.permute.xlu2 %802 }
0x11a4   :  { %vm804_vm10 = vcmp.ge.s32.totalorder %v1670_v3, %v803_v25  ;;  %vm805_vm11 = vcmp.ge.s32.totalorder %v1674_v4, %v803_v25 }
0x11a5   :  { %vm1492_vm12 = vmpackc.low %vm804_vm10, %vm804_vm10 }
0x11a6   :  { %vm1494_vm13 = vmpackc.low %vm805_vm11, %vm805_vm11  ;;  %1493 = vmatmul.msk.bf16.vlgmr.msrb.gmra.mxu0 %vm1492_vm12, %v1633_v5 }
0x11a7   :  { %1495 = vmatmul.msk.bf16.vlgmr.msrb.gmra.mxu1 %vm1494_vm13, %v1633_v5  ;;  %984 = vmatpush.bf16.msrb.mxu0 %v1632_v0 }
0x11a8   :  { %997 = vmatpush.bf16.msrb.mxu1 %v1632_v0 }
0x11ab   :  { %985 = vmatpush.bf16.msrb.mxu0 %v1632_v0 }
0x11ac   :  { %998 = vmatpush.bf16.msrb.mxu1 %v1632_v0 }
0x11af   :  { %986 = vmatpush.bf16.msrb.mxu0 %v1632_v0 }
0x11b0   :  { %999 = vmatpush.bf16.msrb.mxu1 %v1632_v0 }
0x11b3   :  { %987 = vmatpush.bf16.msrb.mxu0 %v1632_v0 }
0x11b4   :  { %1000 = vmatpush.bf16.msrb.mxu1 %v1632_v0 }
0x11b7   :  { %988 = vmatpush.bf16.msrb.mxu0 %v1632_v0 }
0x11b8   :  { %1001 = vmatpush.bf16.msrb.mxu1 %v1632_v0 }
0x11bb   :  { %989 = vmatpush.bf16.msrb.mxu0 %v1632_v0 }
0x11bc   :  { %1002 = vmatpush.bf16.msrb.mxu1 %v1632_v0 }
0x11bf   :  { %990 = vmatpush.bf16.msrb.mxu0 %v1632_v0 }
0x11c0   :  { %1003 = vmatpush.bf16.msrb.mxu1 %v1632_v0 }
0x11c3   :  { %991 = vmatpush.bf16.msrb.mxu0 %v1632_v0 }
0x11c4   :  { %1004 = vmatpush.bf16.msrb.mxu1 %v1632_v0 }
0x1223   :  { %v821_v26 = vpop.f32.mrf.mxu0 }
0x1224   :  { %v834_v27 = vpop.f32.mrf.mxu1 }
0x1225   :  { %v835_v28 = vadd.f32 %v834_v27, %v821_v26 }
0x1227   :  { %vm838_vm14 = vcmp.ge.f32.partialorder %v835_v28, 128.0 }
0x1228   :  { %v839_v29 = vsel %vm838_vm14, %v800_v24, %v796_v18  ;;  %v840_v30 = vsel %vm838_vm14, %v797_v19, %v800_v24 }
0x1229   :  { %v841_v31 = vsub.s32 %v840_v30, %v839_v29 }
0x122b   :  { %v842_v32 = vshra.s32 %v841_v31, 1  ;;  %v823_v33 = vpop.f32.mrf.mxu0 }
0x122c   :  { %v836_v34 = vpop.f32.mrf.mxu1 }
0x122d   :  { %v843_v35 = vadd.s32 %v842_v32, %v839_v29 }
0x122f   :  { %845 = vperm.xlu0 %1574, %v843_v35  }
0x12a1   :  { %v846_v36 = vpop.permute.xlu0 %845 }
0x12a2   :  { %vm847_vm15 = vcmp.ge.s32.totalorder %v1670_v3, %v846_v36  ;;  %vm848_vm0 = vcmp.ge.s32.totalorder %v1674_v4, %v846_v36 }
0x12a3   :  { %vm1498_vm1 = vmpackc.low %vm847_vm15, %vm847_vm15 }
0x12a4   :  { %vm1500_vm2 = vmpackc.low %vm848_vm0, %vm848_vm0  ;;  %1499 = vmatmul.msk.bf16.vlgmr.msrb.gmra.mxu2 %vm1498_vm1, %v1633_v5 }
0x12a5   :  { %1501 = vmatmul.msk.bf16.vlgmr.msrb.gmra.mxu3 %vm1500_vm2, %v1633_v5  ;;  %1027 = vmatpush.bf16.msrb.mxu2 %v1632_v0 }
0x12a6   :  { %1040 = vmatpush.bf16.msrb.mxu3 %v1632_v0 }
0x12a9   :  { %1028 = vmatpush.bf16.msrb.mxu2 %v1632_v0 }
0x12aa   :  { %1041 = vmatpush.bf16.msrb.mxu3 %v1632_v0 }
0x12ad   :  { %1029 = vmatpush.bf16.msrb.mxu2 %v1632_v0 }
0x12ae   :  { %1042 = vmatpush.bf16.msrb.mxu3 %v1632_v0 }
0x12b1   :  { %1030 = vmatpush.bf16.msrb.mxu2 %v1632_v0 }
0x12b2   :  { %1043 = vmatpush.bf16.msrb.mxu3 %v1632_v0 }
0x12b5   :  { %1031 = vmatpush.bf16.msrb.mxu2 %v1632_v0 }
0x12b6   :  { %1044 = vmatpush.bf16.msrb.mxu3 %v1632_v0 }
0x12b9   :  { %1032 = vmatpush.bf16.msrb.mxu2 %v1632_v0 }
0x12ba   :  { %1045 = vmatpush.bf16.msrb.mxu3 %v1632_v0 }
0x12bd   :  { %1033 = vmatpush.bf16.msrb.mxu2 %v1632_v0 }
0x12be   :  { %1046 = vmatpush.bf16.msrb.mxu3 %v1632_v0 }
0x12c1   :  { %1034 = vmatpush.bf16.msrb.mxu2 %v1632_v0 }
0x12c2   :  { %1047 = vmatpush.bf16.msrb.mxu3 %v1632_v0 }
0x1327   :  { %v864_v37 = vpop.f32.mrf.mxu2 }
0x1328   :  { %v877_v38 = vpop.f32.mrf.mxu3 }
0x1329   :  { %v878_v39 = vadd.f32 %v877_v38, %v864_v37 }
0x132b   :  { %vm881_vm3 = vcmp.ge.f32.partialorder %v878_v39, 128.0 }
0x132c   :  { %v882_v40 = vsel %vm881_vm3, %v843_v35, %v839_v29  ;;  %v883_v41 = vsel %vm881_vm3, %v840_v30, %v843_v35 }
0x132d   :  { %v884_v42 = vsub.s32 %v883_v41, %v882_v40 }
0x132f   :  { %v885_v43 = vshra.s32 %v884_v42, 1  ;;  %v866_v44 = vpop.f32.mrf.mxu2 }
0x1330   :  { %v879_v45 = vpop.f32.mrf.mxu3 }
0x1331   :  { %v886_v46 = vadd.s32 %v885_v43, %v882_v40 }
0x1333   :  { %888 = vperm.xlu1 %1575, %v886_v46  }
0x13a5   :  { %v889_v47 = vpop.permute.xlu1 %888 }
0x13a6   :  { %vm890_vm4 = vcmp.ge.s32.totalorder %v1670_v3, %v889_v47  ;;  %vm891_vm5 = vcmp.ge.s32.totalorder %v1674_v4, %v889_v47 }
0x13a7   :  { %vm1504_vm6 = vmpackc.low %vm890_vm4, %vm890_vm4 }
0x13a8   :  { %vm1506_vm7 = vmpackc.low %vm891_vm5, %vm891_vm5  ;;  %1505 = vmatmul.msk.bf16.vlgmr.msra.gmra.mxu0 %vm1504_vm6, %v1633_v5 }
0x13a9   :  { %1507 = vmatmul.msk.bf16.vlgmr.msra.gmra.mxu1 %vm1506_vm7, %v1633_v5  ;;  %1070 = vmatpush.bf16.msra.mxu0 %v1632_v0 }
0x13aa   :  { %1083 = vmatpush.bf16.msra.mxu1 %v1632_v0 }
0x13ad   :  { %1071 = vmatpush.bf16.msra.mxu0 %v1632_v0 }
0x13ae   :  { %1084 = vmatpush.bf16.msra.mxu1 %v1632_v0 }
0x13b1   :  { %1072 = vmatpush.bf16.msra.mxu0 %v1632_v0 }
0x13b2   :  { %1085 = vmatpush.bf16.msra.mxu1 %v1632_v0 }
0x13b5   :  { %1073 = vmatpush.bf16.msra.mxu0 %v1632_v0 }
0x13b6   :  { %1086 = vmatpush.bf16.msra.mxu1 %v1632_v0 }
0x13b9   :  { %1074 = vmatpush.bf16.msra.mxu0 %v1632_v0 }
0x13ba   :  { %1087 = vmatpush.bf16.msra.mxu1 %v1632_v0 }
0x13bd   :  { %1075 = vmatpush.bf16.msra.mxu0 %v1632_v0 }
0x13be   :  { %1088 = vmatpush.bf16.msra.mxu1 %v1632_v0 }
0x13c1   :  { %1076 = vmatpush.bf16.msra.mxu0 %v1632_v0 }
0x13c2   :  { %1089 = vmatpush.bf16.msra.mxu1 %v1632_v0 }
0x13c5   :  { %1077 = vmatpush.bf16.msra.mxu0 %v1632_v0 }
0x13c6   :  { %1090 = vmatpush.bf16.msra.mxu1 %v1632_v0 }
0x1425   :  { %v907_v48 = vpop.f32.mrf.mxu0 }
0x1426   :  { %v920_v49 = vpop.f32.mrf.mxu1 }
0x1427   :  { %v921_v50 = vadd.f32 %v920_v49, %v907_v48 }
0x1429   :  { %vm924_vm8 = vcmp.ge.f32.partialorder %v921_v50, 128.0 }
0x142a   :  { %v925_v51 = vsel %vm924_vm8, %v886_v46, %v882_v40  ;;  %v926_v52 = vsel %vm924_vm8, %v883_v41, %v886_v46 }
0x142b   :  { %v927_v53 = vsub.s32 %v926_v52, %v925_v51 }
0x142d   :  { %v928_v54 = vshra.s32 %v927_v53, 1  ;;  %v909_v55 = vpop.f32.mrf.mxu0 }
0x142e   :  { %v922_v56 = vpop.f32.mrf.mxu1 }
0x142f   :  { %v929_v57 = vadd.s32 %v928_v54, %v925_v51 }
0x1431   :  { %931 = vperm.xlu2 %1576, %v929_v57  }
0x148b   :  { %v932_v58 = vpop.permute.xlu2 %931 }
0x148c   :  { %vm933_vm9 = vcmp.ge.s32.totalorder %v1670_v3, %v932_v58  ;;  %vm934_vm10 = vcmp.ge.s32.totalorder %v1674_v4, %v932_v58 }
0x148d   :  { %vm1510_vm11 = vmpackc.low %vm933_vm9, %vm933_vm9 }
0x148e   :  { %vm1512_vm12 = vmpackc.low %vm934_vm10, %vm934_vm10  ;;  %1511 = vmatmul.msk.bf16.vlgmr.msra.gmra.mxu2 %vm1510_vm11, %v1633_v5 }
0x148f   :  { %1513 = vmatmul.msk.bf16.vlgmr.msra.gmra.mxu3 %vm1512_vm12, %v1633_v5  ;;  %1113 = vmatpush.bf16.msra.mxu2 %v1632_v0 }
0x1490   :  { %1126 = vmatpush.bf16.msra.mxu3 %v1632_v0 }
0x1493   :  { %1114 = vmatpush.bf16.msra.mxu2 %v1632_v0 }
0x1494   :  { %1127 = vmatpush.bf16.msra.mxu3 %v1632_v0 }
0x1497   :  { %1115 = vmatpush.bf16.msra.mxu2 %v1632_v0 }
0x1498   :  { %1128 = vmatpush.bf16.msra.mxu3 %v1632_v0 }
0x149b   :  { %1116 = vmatpush.bf16.msra.mxu2 %v1632_v0 }
0x149c   :  { %1129 = vmatpush.bf16.msra.mxu3 %v1632_v0 }
0x149f   :  { %1117 = vmatpush.bf16.msra.mxu2 %v1632_v0 }
0x14a0   :  { %1130 = vmatpush.bf16.msra.mxu3 %v1632_v0 }
0x14a3   :  { %1118 = vmatpush.bf16.msra.mxu2 %v1632_v0 }
0x14a4   :  { %1131 = vmatpush.bf16.msra.mxu3 %v1632_v0 }
0x14a7   :  { %1119 = vmatpush.bf16.msra.mxu2 %v1632_v0 }
0x14a8   :  { %1132 = vmatpush.bf16.msra.mxu3 %v1632_v0 }
0x14ab   :  { %1120 = vmatpush.bf16.msra.mxu2 %v1632_v0 }
0x14ac   :  { %1133 = vmatpush.bf16.msra.mxu3 %v1632_v0 }
0x1511   :  { %v950_v59 = vpop.f32.mrf.mxu2 }
0x1512   :  { %v963_v60 = vpop.f32.mrf.mxu3 }
0x1513   :  { %v964_v61 = vadd.f32 %v963_v60, %v950_v59 }
0x1515   :  { %vm967_vm13 = vcmp.ge.f32.partialorder %v964_v61, 128.0 }
0x1516   :  { %v968_v62 = vsel %vm967_vm13, %v929_v57, %v925_v51  ;;  %v969_v63 = vsel %vm967_vm13, %v926_v52, %v929_v57 }
0x1517   :  { %v970_v1 = vsub.s32 %v969_v63, %v968_v62 }
0x1519   :  { %v971_v2 = vshra.s32 %v970_v1, 1  ;;  %v952_v6 = vpop.f32.mrf.mxu2 }
0x151a   :  { %v965_v7 = vpop.f32.mrf.mxu3 }
0x151b   :  { %v972_v8 = vadd.s32 %v971_v2, %v968_v62 }
0x151d   :  { %974 = vperm.xlu0 %1574, %v972_v8  }
0x158f   :  { %v975_v9 = vpop.permute.xlu0 %974 }
0x1590   :  { %vm976_vm14 = vcmp.ge.s32.totalorder %v1670_v3, %v975_v9  ;;  %vm977_vm15 = vcmp.ge.s32.totalorder %v1674_v4, %v975_v9 }
0x1591   :  { %vm1516_vm0 = vmpackc.low %vm976_vm14, %vm976_vm14 }
0x1592   :  { %vm1518_vm1 = vmpackc.low %vm977_vm15, %vm977_vm15  ;;  %1517 = vmatmul.msk.bf16.vlgmr.msrb.gmra.mxu0 %vm1516_vm0, %v1633_v5 }
0x1593   :  { %1519 = vmatmul.msk.bf16.vlgmr.msrb.gmra.mxu1 %vm1518_vm1, %v1633_v5  ;;  %1156 = vmatpush.bf16.msrb.mxu0 %v1632_v0 }
0x1594   :  { %1169 = vmatpush.bf16.msrb.mxu1 %v1632_v0 }
0x1597   :  { %1157 = vmatpush.bf16.msrb.mxu0 %v1632_v0 }
0x1598   :  { %1170 = vmatpush.bf16.msrb.mxu1 %v1632_v0 }
0x159b   :  { %1158 = vmatpush.bf16.msrb.mxu0 %v1632_v0 }
0x159c   :  { %1171 = vmatpush.bf16.msrb.mxu1 %v1632_v0 }
0x159f   :  { %1159 = vmatpush.bf16.msrb.mxu0 %v1632_v0 }
0x15a0   :  { %1172 = vmatpush.bf16.msrb.mxu1 %v1632_v0 }
0x15a3   :  { %1160 = vmatpush.bf16.msrb.mxu0 %v1632_v0 }
0x15a4   :  { %1173 = vmatpush.bf16.msrb.mxu1 %v1632_v0 }
0x15a7   :  { %1161 = vmatpush.bf16.msrb.mxu0 %v1632_v0 }
0x15a8   :  { %1174 = vmatpush.bf16.msrb.mxu1 %v1632_v0 }
0x15ab   :  { %1162 = vmatpush.bf16.msrb.mxu0 %v1632_v0 }
0x15ac   :  { %1175 = vmatpush.bf16.msrb.mxu1 %v1632_v0 }
0x15af   :  { %1163 = vmatpush.bf16.msrb.mxu0 %v1632_v0 }
0x15b0   :  { %1176 = vmatpush.bf16.msrb.mxu1 %v1632_v0 }
0x160f   :  { %v993_v10 = vpop.f32.mrf.mxu0 }
0x1610   :  { %v1006_v11 = vpop.f32.mrf.mxu1 }
0x1611   :  { %v1007_v12 = vadd.f32 %v1006_v11, %v993_v10 }
0x1613   :  { %vm1010_vm2 = vcmp.ge.f32.partialorder %v1007_v12, 128.0 }
0x1614   :  { %v1011_v13 = vsel %vm1010_vm2, %v972_v8, %v968_v62  ;;  %v1012_v14 = vsel %vm1010_vm2, %v969_v63, %v972_v8 }
0x1615   :  { %v1013_v15 = vsub.s32 %v1012_v14, %v1011_v13 }
0x1617   :  { %v1014_v16 = vshra.s32 %v1013_v15, 1  ;;  %v995_v17 = vpop.f32.mrf.mxu0 }
0x1618   :  { %v1008_v18 = vpop.f32.mrf.mxu1 }
0x1619   :  { %v1015_v19 = vadd.s32 %v1014_v16, %v1011_v13 }
0x161b   :  { %1017 = vperm.xlu1 %1575, %v1015_v19  }
0x168d   :  { %v1018_v20 = vpop.permute.xlu1 %1017 }
0x168e   :  { %vm1019_vm3 = vcmp.ge.s32.totalorder %v1670_v3, %v1018_v20  ;;  %vm1020_vm4 = vcmp.ge.s32.totalorder %v1674_v4, %v1018_v20 }
0x168f   :  { %vm1522_vm5 = vmpackc.low %vm1019_vm3, %vm1019_vm3 }
0x1690   :  { %vm1524_vm6 = vmpackc.low %vm1020_vm4, %vm1020_vm4  ;;  %1523 = vmatmul.msk.bf16.vlgmr.msrb.gmra.mxu2 %vm1522_vm5, %v1633_v5 }
0x1691   :  { %1525 = vmatmul.msk.bf16.vlgmr.msrb.gmra.mxu3 %vm1524_vm6, %v1633_v5  ;;  %1199 = vmatpush.bf16.msrb.mxu2 %v1632_v0 }
0x1692   :  { %1212 = vmatpush.bf16.msrb.mxu3 %v1632_v0 }
0x1695   :  { %1200 = vmatpush.bf16.msrb.mxu2 %v1632_v0 }
0x1696   :  { %1213 = vmatpush.bf16.msrb.mxu3 %v1632_v0 }
0x1699   :  { %1201 = vmatpush.bf16.msrb.mxu2 %v1632_v0 }
0x169a   :  { %1214 = vmatpush.bf16.msrb.mxu3 %v1632_v0 }
0x169d   :  { %1202 = vmatpush.bf16.msrb.mxu2 %v1632_v0 }
0x169e   :  { %1215 = vmatpush.bf16.msrb.mxu3 %v1632_v0 }
0x16a1   :  { %1203 = vmatpush.bf16.msrb.mxu2 %v1632_v0 }
0x16a2   :  { %1216 = vmatpush.bf16.msrb.mxu3 %v1632_v0 }
0x16a5   :  { %1204 = vmatpush.bf16.msrb.mxu2 %v1632_v0 }
0x16a6   :  { %1217 = vmatpush.bf16.msrb.mxu3 %v1632_v0 }
0x16a9   :  { %1205 = vmatpush.bf16.msrb.mxu2 %v1632_v0 }
0x16aa   :  { %1218 = vmatpush.bf16.msrb.mxu3 %v1632_v0 }
0x16ad   :  { %1206 = vmatpush.bf16.msrb.mxu2 %v1632_v0 }
0x16ae   :  { %1219 = vmatpush.bf16.msrb.mxu3 %v1632_v0 }
0x1713   :  { %v1036_v21 = vpop.f32.mrf.mxu2 }
0x1714   :  { %v1049_v22 = vpop.f32.mrf.mxu3 }
0x1715   :  { %v1050_v23 = vadd.f32 %v1049_v22, %v1036_v21 }
0x1717   :  { %vm1053_vm7 = vcmp.ge.f32.partialorder %v1050_v23, 128.0 }
0x1718   :  { %v1054_v24 = vsel %vm1053_vm7, %v1015_v19, %v1011_v13  ;;  %v1055_v25 = vsel %vm1053_vm7, %v1012_v14, %v1015_v19 }
0x1719   :  { %v1056_v26 = vsub.s32 %v1055_v25, %v1054_v24 }
0x171b   :  { %v1057_v27 = vshra.s32 %v1056_v26, 1  ;;  %v1038_v28 = vpop.f32.mrf.mxu2 }
0x171c   :  { %v1051_v29 = vpop.f32.mrf.mxu3 }
0x171d   :  { %v1058_v30 = vadd.s32 %v1057_v27, %v1054_v24 }
0x171f   :  { %1060 = vperm.xlu2 %1576, %v1058_v30  }
0x1779   :  { %v1061_v31 = vpop.permute.xlu2 %1060 }
0x177a   :  { %vm1062_vm8 = vcmp.ge.s32.totalorder %v1670_v3, %v1061_v31  ;;  %vm1063_vm9 = vcmp.ge.s32.totalorder %v1674_v4, %v1061_v31 }
0x177b   :  { %vm1528_vm10 = vmpackc.low %vm1062_vm8, %vm1062_vm8 }
0x177c   :  { %vm1530_vm11 = vmpackc.low %vm1063_vm9, %vm1063_vm9  ;;  %1529 = vmatmul.msk.bf16.vlgmr.msra.gmra.mxu0 %vm1528_vm10, %v1633_v5 }
0x177d   :  { %1531 = vmatmul.msk.bf16.vlgmr.msra.gmra.mxu1 %vm1530_vm11, %v1633_v5  ;;  %1242 = vmatpush.bf16.msra.mxu0 %v1632_v0 }
0x177e   :  { %1255 = vmatpush.bf16.msra.mxu1 %v1632_v0 }
0x1781   :  { %1243 = vmatpush.bf16.msra.mxu0 %v1632_v0 }
0x1782   :  { %1256 = vmatpush.bf16.msra.mxu1 %v1632_v0 }
0x1785   :  { %1244 = vmatpush.bf16.msra.mxu0 %v1632_v0 }
0x1786   :  { %1257 = vmatpush.bf16.msra.mxu1 %v1632_v0 }
0x1789   :  { %1245 = vmatpush.bf16.msra.mxu0 %v1632_v0 }
0x178a   :  { %1258 = vmatpush.bf16.msra.mxu1 %v1632_v0 }
0x178d   :  { %1246 = vmatpush.bf16.msra.mxu0 %v1632_v0 }
0x178e   :  { %1259 = vmatpush.bf16.msra.mxu1 %v1632_v0 }
0x1791   :  { %1247 = vmatpush.bf16.msra.mxu0 %v1632_v0 }
0x1792   :  { %1260 = vmatpush.bf16.msra.mxu1 %v1632_v0 }
0x1795   :  { %1248 = vmatpush.bf16.msra.mxu0 %v1632_v0 }
0x1796   :  { %1261 = vmatpush.bf16.msra.mxu1 %v1632_v0 }
0x1799   :  { %1249 = vmatpush.bf16.msra.mxu0 %v1632_v0 }
0x179a   :  { %1262 = vmatpush.bf16.msra.mxu1 %v1632_v0 }
0x17f9   :  { %v1079_v32 = vpop.f32.mrf.mxu0 }
0x17fa   :  { %v1092_v33 = vpop.f32.mrf.mxu1 }
0x17fb   :  { %v1093_v34 = vadd.f32 %v1092_v33, %v1079_v32 }
0x17fd   :  { %vm1096_vm12 = vcmp.ge.f32.partialorder %v1093_v34, 128.0 }
0x17fe   :  { %v1097_v35 = vsel %vm1096_vm12, %v1058_v30, %v1054_v24  ;;  %v1098_v36 = vsel %vm1096_vm12, %v1055_v25, %v1058_v30 }
0x17ff   :  { %v1099_v37 = vsub.s32 %v1098_v36, %v1097_v35 }
0x1801   :  { %v1100_v38 = vshra.s32 %v1099_v37, 1  ;;  %v1081_v39 = vpop.f32.mrf.mxu0 }
0x1802   :  { %v1094_v40 = vpop.f32.mrf.mxu1 }
0x1803   :  { %v1101_v41 = vadd.s32 %v1100_v38, %v1097_v35 }
0x1805   :  { %1103 = vperm.xlu0 %1574, %v1101_v41  }
0x1877   :  { %v1104_v42 = vpop.permute.xlu0 %1103 }
0x1878   :  { %vm1105_vm13 = vcmp.ge.s32.totalorder %v1670_v3, %v1104_v42  ;;  %vm1106_vm14 = vcmp.ge.s32.totalorder %v1674_v4, %v1104_v42 }
0x1879   :  { %vm1534_vm15 = vmpackc.low %vm1105_vm13, %vm1105_vm13 }
0x187a   :  { %vm1536_vm0 = vmpackc.low %vm1106_vm14, %vm1106_vm14  ;;  %1535 = vmatmul.msk.bf16.vlgmr.msra.gmra.mxu2 %vm1534_vm15, %v1633_v5 }
0x187b   :  { %1537 = vmatmul.msk.bf16.vlgmr.msra.gmra.mxu3 %vm1536_vm0, %v1633_v5  ;;  %1285 = vmatpush.bf16.msra.mxu2 %v1632_v0 }
0x187c   :  { %1298 = vmatpush.bf16.msra.mxu3 %v1632_v0 }
0x187f   :  { %1286 = vmatpush.bf16.msra.mxu2 %v1632_v0 }
0x1880   :  { %1299 = vmatpush.bf16.msra.mxu3 %v1632_v0 }
0x1883   :  { %1287 = vmatpush.bf16.msra.mxu2 %v1632_v0 }
0x1884   :  { %1300 = vmatpush.bf16.msra.mxu3 %v1632_v0 }
0x1887   :  { %1288 = vmatpush.bf16.msra.mxu2 %v1632_v0 }
0x1888   :  { %1301 = vmatpush.bf16.msra.mxu3 %v1632_v0 }
0x188b   :  { %1289 = vmatpush.bf16.msra.mxu2 %v1632_v0 }
0x188c   :  { %1302 = vmatpush.bf16.msra.mxu3 %v1632_v0 }
0x188f   :  { %1290 = vmatpush.bf16.msra.mxu2 %v1632_v0 }
0x1890   :  { %1303 = vmatpush.bf16.msra.mxu3 %v1632_v0 }
0x1893   :  { %1291 = vmatpush.bf16.msra.mxu2 %v1632_v0 }
0x1894   :  { %1304 = vmatpush.bf16.msra.mxu3 %v1632_v0 }
0x1897   :  { %1292 = vmatpush.bf16.msra.mxu2 %v1632_v0 }
0x1898   :  { %1305 = vmatpush.bf16.msra.mxu3 %v1632_v0 }
0x18fd   :  { %v1122_v43 = vpop.f32.mrf.mxu2 }
0x18fe   :  { %v1135_v44 = vpop.f32.mrf.mxu3 }
0x18ff   :  { %v1136_v45 = vadd.f32 %v1135_v44, %v1122_v43 }
0x1901   :  { %vm1139_vm1 = vcmp.ge.f32.partialorder %v1136_v45, 128.0  ;;  %v1578_v45 = vld [vmem:[#allocation2 + $0x8] sm:$0xff] }
0x1902   :  { %v1140_v46 = vsel %vm1139_vm1, %v1101_v41, %v1097_v35  ;;  %v1141_v47 = vsel %vm1139_vm1, %v1098_v36, %v1101_v41 }
0x1903   :  { %v1142_v48 = vsub.s32 %v1141_v47, %v1140_v46 }
0x1905   :  { %v1143_v49 = vshra.s32 %v1142_v48, 1  ;;  %v1124_v50 = vpop.f32.mrf.mxu2 }
0x1906   :  { %v1137_v51 = vpop.f32.mrf.mxu3 }
0x1907   :  { %v1144_v52 = vadd.s32 %v1143_v49, %v1140_v46 }
0x1909   :  { %1146 = vperm.xlu1 %1575, %v1144_v52  }
0x197b   :  { %v1147_v53 = vpop.permute.xlu1 %1146 }
0x197c   :  { %vm1148_vm2 = vcmp.ge.s32.totalorder %v1670_v3, %v1147_v53  ;;  %vm1149_vm3 = vcmp.ge.s32.totalorder %v1674_v4, %v1147_v53 }
0x197d   :  { %vm1540_vm4 = vmpackc.low %vm1148_vm2, %vm1148_vm2 }
0x197e   :  { %vm1542_vm5 = vmpackc.low %vm1149_vm3, %vm1149_vm3  ;;  %1541 = vmatmul.msk.bf16.vlgmr.msrb.gmra.mxu0 %vm1540_vm4, %v1633_v5 }
0x197f   :  { %1543 = vmatmul.msk.bf16.vlgmr.msrb.gmra.mxu1 %vm1542_vm5, %v1633_v5  ;;  %1328 = vmatpush.bf16.msrb.mxu0 %v1632_v0 }
0x1980   :  { %1341 = vmatpush.bf16.msrb.mxu1 %v1632_v0 }
0x1983   :  { %1329 = vmatpush.bf16.msrb.mxu0 %v1632_v0 }
0x1984   :  { %1342 = vmatpush.bf16.msrb.mxu1 %v1632_v0 }
0x1987   :  { %1330 = vmatpush.bf16.msrb.mxu0 %v1632_v0 }
0x1988   :  { %1343 = vmatpush.bf16.msrb.mxu1 %v1632_v0 }
0x198b   :  { %1331 = vmatpush.bf16.msrb.mxu0 %v1632_v0 }
0x198c   :  { %1344 = vmatpush.bf16.msrb.mxu1 %v1632_v0 }
0x198f   :  { %1332 = vmatpush.bf16.msrb.mxu0 %v1632_v0 }
0x1990   :  { %1345 = vmatpush.bf16.msrb.mxu1 %v1632_v0 }
0x1993   :  { %1333 = vmatpush.bf16.msrb.mxu0 %v1632_v0 }
0x1994   :  { %1346 = vmatpush.bf16.msrb.mxu1 %v1632_v0 }
0x1997   :  { %1334 = vmatpush.bf16.msrb.mxu0 %v1632_v0 }
0x1998   :  { %1347 = vmatpush.bf16.msrb.mxu1 %v1632_v0 }
0x199b   :  { %1335 = vmatpush.bf16.msrb.mxu0 %v1632_v0 }
0x199c   :  { %1348 = vmatpush.bf16.msrb.mxu1 %v1632_v0 }
0x19fb   :  { %v1165_v54 = vpop.f32.mrf.mxu0 }
0x19fc   :  { %v1178_v55 = vpop.f32.mrf.mxu1 }
0x19fd   :  { %v1179_v56 = vadd.f32 %v1178_v55, %v1165_v54 }
0x19ff   :  { %vm1182_vm6 = vcmp.ge.f32.partialorder %v1179_v56, 128.0 }
0x1a00   :  { %v1183_v57 = vsel %vm1182_vm6, %v1144_v52, %v1140_v46  ;;  %v1184_v58 = vsel %vm1182_vm6, %v1141_v47, %v1144_v52 }
0x1a01   :  { %v1185_v59 = vsub.s32 %v1184_v58, %v1183_v57 }
0x1a03   :  { %v1186_v60 = vshra.s32 %v1185_v59, 1  ;;  %v1167_v61 = vpop.f32.mrf.mxu0 }
0x1a04   :  { %v1180_v62 = vpop.f32.mrf.mxu1 }
0x1a05   :  { %v1187_v63 = vadd.s32 %v1186_v60, %v1183_v57 }
0x1a07   :  { %1189 = vperm.xlu2 %1576, %v1187_v63  }
0x1a61   :  { %v1190_v1 = vpop.permute.xlu2 %1189 }
0x1a62   :  { %vm1191_vm7 = vcmp.ge.s32.totalorder %v1670_v3, %v1190_v1  ;;  %vm1192_vm8 = vcmp.ge.s32.totalorder %v1674_v4, %v1190_v1 }
0x1a63   :  { %vm1546_vm9 = vmpackc.low %vm1191_vm7, %vm1191_vm7 }
0x1a64   :  { %vm1548_vm10 = vmpackc.low %vm1192_vm8, %vm1192_vm8  ;;  %1547 = vmatmul.msk.bf16.vlgmr.msrb.gmra.mxu2 %vm1546_vm9, %v1633_v5 }
0x1a65   :  { %1549 = vmatmul.msk.bf16.vlgmr.msrb.gmra.mxu3 %vm1548_vm10, %v1633_v5 }
0x1ae7   :  { %v1208_v0 = vpop.f32.mrf.mxu2 }
0x1ae8   :  { %v1221_v2 = vpop.f32.mrf.mxu3 }
0x1ae9   :  { %v1222_v6 = vadd.f32 %v1221_v2, %v1208_v0 }
0x1aeb   :  { %vm1225_vm11 = vcmp.ge.f32.partialorder %v1222_v6, 128.0 }
0x1aec   :  { %v1226_v7 = vsel %vm1225_vm11, %v1187_v63, %v1183_v57  ;;  %v1227_v8 = vsel %vm1225_vm11, %v1184_v58, %v1187_v63 }
0x1aed   :  { %v1228_v9 = vsub.s32 %v1227_v8, %v1226_v7 }
0x1aef   :  { %v1229_v10 = vshra.s32 %v1228_v9, 1  ;;  %v1210_v11 = vpop.f32.mrf.mxu2 }
0x1af0   :  { %v1223_v12 = vpop.f32.mrf.mxu3 }
0x1af1   :  { %v1230_v13 = vadd.s32 %v1229_v10, %v1226_v7 }
0x1af3   :  { %1232 = vperm.xlu0 %1574, %v1230_v13  }
0x1b65   :  { %v1233_v14 = vpop.permute.xlu0 %1232 }
0x1b66   :  { %vm1234_vm12 = vcmp.ge.s32.totalorder %v1670_v3, %v1233_v14  ;;  %vm1235_vm13 = vcmp.ge.s32.totalorder %v1674_v4, %v1233_v14 }
0x1b67   :  { %vm1552_vm14 = vmpackc.low %vm1234_vm12, %vm1234_vm12 }
0x1b68   :  { %vm1554_vm15 = vmpackc.low %vm1235_vm13, %vm1235_vm13  ;;  %1553 = vmatmul.msk.bf16.vlgmr.msra.gmra.mxu0 %vm1552_vm14, %v1633_v5 }
0x1b69   :  { %1555 = vmatmul.msk.bf16.vlgmr.msra.gmra.mxu1 %vm1554_vm15, %v1633_v5 }
0x1be5   :  { %v1251_v15 = vpop.f32.mrf.mxu0 }
0x1be6   :  { %v1264_v16 = vpop.f32.mrf.mxu1 }
0x1be7   :  { %v1265_v17 = vadd.f32 %v1264_v16, %v1251_v15 }
0x1be9   :  { %vm1268_vm0 = vcmp.ge.f32.partialorder %v1265_v17, 128.0 }
0x1bea   :  { %v1269_v18 = vsel %vm1268_vm0, %v1230_v13, %v1226_v7  ;;  %v1270_v19 = vsel %vm1268_vm0, %v1227_v8, %v1230_v13 }
0x1beb   :  { %v1271_v20 = vsub.s32 %v1270_v19, %v1269_v18 }
0x1bed   :  { %v1272_v21 = vshra.s32 %v1271_v20, 1  ;;  %v1253_v22 = vpop.f32.mrf.mxu0 }
0x1bee   :  { %v1266_v23 = vpop.f32.mrf.mxu1 }
0x1bef   :  { %v1273_v24 = vadd.s32 %v1272_v21, %v1269_v18 }
0x1bf1   :  { %1275 = vperm.xlu1 %1575, %v1273_v24  }
0x1c63   :  { %v1276_v25 = vpop.permute.xlu1 %1275 }
0x1c64   :  { %vm1277_vm1 = vcmp.ge.s32.totalorder %v1670_v3, %v1276_v25  ;;  %vm1278_vm2 = vcmp.ge.s32.totalorder %v1674_v4, %v1276_v25 }
0x1c65   :  { %vm1558_vm3 = vmpackc.low %vm1277_vm1, %vm1277_vm1 }
0x1c66   :  { %vm1560_vm4 = vmpackc.low %vm1278_vm2, %vm1278_vm2  ;;  %1559 = vmatmul.msk.bf16.vlgmr.msra.gmra.mxu2 %vm1558_vm3, %v1633_v5 }
0x1c67   :  { %1561 = vmatmul.msk.bf16.vlgmr.msra.gmra.mxu3 %vm1560_vm4, %v1633_v5 }
0x1ce9   :  { %v1294_v26 = vpop.f32.mrf.mxu2 }
0x1cea   :  { %v1307_v27 = vpop.f32.mrf.mxu3 }
0x1ceb   :  { %v1308_v28 = vadd.f32 %v1307_v27, %v1294_v26 }
0x1ced   :  { %vm1311_vm5 = vcmp.ge.f32.partialorder %v1308_v28, 128.0 }
0x1cee   :  { %v1312_v29 = vsel %vm1311_vm5, %v1273_v24, %v1269_v18  ;;  %v1313_v30 = vsel %vm1311_vm5, %v1270_v19, %v1273_v24 }
0x1cef   :  { %v1314_v31 = vsub.s32 %v1313_v30, %v1312_v29 }
0x1cf1   :  { %v1315_v32 = vshra.s32 %v1314_v31, 1  ;;  %v1296_v33 = vpop.f32.mrf.mxu2 }
0x1cf2   :  { %v1309_v34 = vpop.f32.mrf.mxu3 }
0x1cf3   :  { %v1316_v35 = vadd.s32 %v1315_v32, %v1312_v29 }
0x1cf5   :  { %1318 = vperm.xlu2 %1576, %v1316_v35  }
0x1d4f   :  { %v1319_v36 = vpop.permute.xlu2 %1318 }
0x1d50   :  { %vm1320_vm6 = vcmp.ge.s32.totalorder %v1670_v3, %v1319_v36  ;;  %vm1321_vm7 = vcmp.ge.s32.totalorder %v1674_v4, %v1319_v36 }
0x1d51   :  { %vm1564_vm8 = vmpackc.low %vm1320_vm6, %vm1320_vm6 }
0x1d52   :  { %vm1566_vm9 = vmpackc.low %vm1321_vm7, %vm1321_vm7  ;;  %1565 = vmatmul.msk.bf16.vlgmr.msrb.gmra.mxu0 %vm1564_vm8, %v1633_v5 }
0x1d53   :  { %1567 = vmatmul.msk.bf16.vlgmr.msrb.gmra.mxu1 %vm1566_vm9, %v1633_v5  ;;  %v1577_v5 = vld [vmem:[#allocation2] sm:$0xff] }
0x1dcf   :  { %v1337_v37 = vpop.f32.mrf.mxu0 }
0x1dd0   :  { %v1350_v38 = vpop.f32.mrf.mxu1 }
0x1dd1   :  { %v1351_v39 = vadd.f32 %v1350_v38, %v1337_v37 }
0x1dd3   :  { %vm1354_vm10 = vcmp.ge.f32.partialorder %v1351_v39, 128.0 }
0x1dd4   :  { %v1355_v40 = vsel %vm1354_vm10, %v1316_v35, %v1312_v29 }
0x1dd5   :  { %1357 = vperm.xlu0 %1574, %v1355_v40  }
0x1dd7   :  { %v1339_v41 = vpop.f32.mrf.mxu0 }
0x1dd8   :  { %v1352_v42 = vpop.f32.mrf.mxu1 }
0x1e47   :  { %v1358_v43 = vpop.permute.xlu0 %1357 }
0x1e48   :  { %vm1359_vm11 = vcmp.ge.s32.totalorder %v1670_v3, %v1358_v43  ;;  %vm1360_vm12 = vcmp.ge.s32.totalorder %v1674_v4, %v1358_v43 }
0x1e49   :  { %v1361_v44 = vsel %vm1359_vm11, %v1577_v5, 0.0  ;;  %v1362_v46 = vsel %vm1360_vm12, %v1578_v45, 0.0 }
0x1e4a   :  { %1363 = vst [vmem:[#allocation5] sm:$0xff] %v1361_v44 }
0x1e4b   :  { %1364 = vst [vmem:[#allocation5 + $0x8] sm:$0xff] %v1362_v46 }
0x1e4c   :  { %1375 = dma.vmem_to_hbm [thread:$0]  %s1371_s11, 256, %s1373_s14, [#allocation4]  }
0x1e4d   :  { %1629 = dma.done.wait [#allocation4], 256  }
0x1e4e   :  { %1630 = vsyncadd [#allocation4], 4294967040 }
0x1e4f   :  { %1380 = vsyncpa [#allocation3], 1 }
0x1e50   :  { %1381 = vsyncpa [#allocation4], 1 }

</bundles_post_ra>
